<compile_context>
chip_gen: v7x
topology: tpu7x:2x2x1
jax: 0.10.0
libtpu: 0.0.40
codegen_flags: <defaults>
</compile_context>

<pallas_src>
import jax
import jax.numpy as jnp
from jax.experimental import pallas as pl
from jax.experimental.pallas import tpu as pltpu

FEAT = 512      # CLIP feature dim
N_OUT = 3       # head output classes
N_PAD = 128     # lane-dense padded output width


def _round_up(x, m):
    return (x + m - 1) // m * m


def _pick_tk(k128):
    """Largest K tile in {512, 384, 256, 128} that evenly divides k128."""
    for cand in (512, 384, 256, 128):
        if k128 % cand == 0:
            return cand
    return 128


def _clip_head_kernel(x_ref, we_ref, be_ref, w1_ref, b1_ref, w2_ref, b2_ref,
                      out_ref, acc_ref):
    # x_ref:  (TB, TK)       bf16 flattened-pixel tile        (streamed)
    # we_ref: (TK, 512)      bf16 frozen encode_image weight  (streamed)
    # be_ref: (1, 512)  f32  encoder bias                     (resident)
    # w1_ref: (512, 512) bf16 fc1 weight                      (resident)
    # b1_ref: (1, 512)  f32  fc1 bias                         (resident)
    # w2_ref: (512, 128) bf16 fc2 weight, zero-padded cols    (resident)
    # b2_ref: (1, 128)  f32  fc2 bias, zero-padded            (resident)
    # out_ref: (TB, 128) f32 lane-dense logits (cols 3..127 are zero)
    # acc_ref: (TB, 512) f32 encoder-feature accumulator
    k = pl.program_id(1)

    @pl.when(k == 0)
    def _():
        acc_ref[...] = jnp.zeros_like(acc_ref)

    # frozen encoder stand-in, accumulated over K tiles (bf16 MXU, f32 acc)
    acc_ref[...] += jnp.dot(x_ref[...], we_ref[...],
                            preferred_element_type=jnp.float32)

    @pl.when(k == pl.num_programs(1) - 1)
    def _():
        feats = acc_ref[...] + be_ref[...]          # bias once, in epilogue
        # fc1 + ReLU
        h = jnp.dot(feats.astype(jnp.bfloat16), w1_ref[...],
                    preferred_element_type=jnp.float32)
        h = jnp.maximum(h + b1_ref[...], 0.0)
        # fc2 (lane-dense, padded to 128 columns)
        o = jnp.dot(h.astype(jnp.bfloat16), w2_ref[...],
                    preferred_element_type=jnp.float32)
        out_ref[...] = (o + b2_ref[...]).astype(out_ref.dtype)


def custom_clip_model(x_img, params):
    """x_img: (B, 3, H, W) float32 NCHW image batch.  Returns (B, 3) logits."""
    B = x_img.shape[0]
    d_in = x_img.shape[1] * x_img.shape[2] * x_img.shape[3]
    x_flat = x_img.reshape(B, d_in)

    # batch tile: >= 8 sublanes, <= 128 rows
    TB = min(128, _round_up(max(B, 8), 8))
    B_pad = _round_up(B, TB)

    # K tile: 128-align d_in first, then pick the largest evenly-dividing tile
    K128 = _round_up(d_in, 128)
    TK = _pick_tk(K128)
    K_pad = K128  # TK divides K128 by construction

    # zero-pad batch rows and K columns; pad encoder weight rows to match.
    x_p = jnp.zeros((B_pad, K_pad), jnp.bfloat16)
    x_p = x_p.at[:B, :d_in].set(x_flat.astype(jnp.bfloat16))

    we_p = jnp.zeros((K_pad, FEAT), jnp.bfloat16)
    we_p = we_p.at[:d_in, :].set(params["we"].astype(jnp.bfloat16))
    be = params["be"].astype(jnp.float32)

    w1 = params["w1"].astype(jnp.bfloat16)
    b1 = params["b1"].astype(jnp.float32)

    # lane-dense fc2: pad (512, 3) -> (512, 128)
    w2_p = jnp.zeros((FEAT, N_PAD), jnp.bfloat16)
    w2_p = w2_p.at[:, :N_OUT].set(params["w2"].astype(jnp.bfloat16))
    b2_p = jnp.zeros((1, N_PAD), jnp.float32)
    b2_p = b2_p.at[:, :N_OUT].set(params["b2"].astype(jnp.float32))

    grid = (B_pad // TB, K_pad // TK)

    out_padded = pl.pallas_call(
        _clip_head_kernel,
        out_shape=jax.ShapeDtypeStruct((B_pad, N_PAD), jnp.float32),
        grid_spec=pltpu.PrefetchScalarGridSpec(
            num_scalar_prefetch=0,
            grid=grid,
            in_specs=[
                pl.BlockSpec((TB, TK), lambda b, k: (b, k)),        # x   (streamed)
                pl.BlockSpec((TK, FEAT), lambda b, k: (k, 0)),      # we  (streamed)
                pl.BlockSpec((1, FEAT), lambda b, k: (0, 0)),       # be  (resident)
                pl.BlockSpec((FEAT, FEAT), lambda b, k: (0, 0)),    # w1  (resident)
                pl.BlockSpec((1, FEAT), lambda b, k: (0, 0)),       # b1  (resident)
                pl.BlockSpec((FEAT, N_PAD), lambda b, k: (0, 0)),   # w2  (resident)
                pl.BlockSpec((1, N_PAD), lambda b, k: (0, 0)),      # b2  (resident)
            ],
            out_specs=pl.BlockSpec((TB, N_PAD), lambda b, k: (b, 0)),
            scratch_shapes=[pltpu.VMEM((TB, FEAT), jnp.float32)],
        ),
        compiler_params=pltpu.CompilerParams(
            dimension_semantics=("parallel", "arbitrary")),
    )(x_p, we_p, be, w1, b1, w2_p, b2_p)

    return out_padded[:B, :N_OUT]


def init_params(key, d_in):
    """Deterministic init mirroring nn.Linear default (uniform +-1/sqrt(fan_in)).
    PyTorch Linear stores weight as (out, in); we store pre-transposed (in, out)."""
    ks = jax.random.split(key, 6)

    def lin(kw, kb, fan_in, fan_out):
        bound = 1.0 / jnp.sqrt(fan_in)
        w = jax.random.uniform(kw, (fan_in, fan_out), jnp.float32, -bound, bound)
        b = jax.random.uniform(kb, (1, fan_out), jnp.float32, -bound, bound)
        return w, b

    we, be = lin(ks[0], ks[1], d_in, FEAT)    # frozen encoder stand-in
    w1, b1 = lin(ks[2], ks[3], FEAT, FEAT)    # fc1
    w2, b2 = lin(ks[4], ks[5], FEAT, N_OUT)   # fc2
    return {"we": we, "be": be, "w1": w1, "b1": b1, "w2": w2, "b2": b2}


if __name__ == "__main__":
    key = jax.random.PRNGKey(0)
    k_x, k_p = jax.random.split(key)

    B, C, H, W = 2, 3, 16, 16          # small CLIP-style image batch (NCHW)
    x = jax.random.normal(k_x, (B, C, H, W), jnp.float32)
    params = init_params(k_p, C * H * W)

    out = custom_clip_model(x, params)
    out = jax.block_until_ready(out)

    # reference check in plain JAX (same bf16 operands, f32 accumulation)
    x_flat = x.reshape(B, -1)
    we_bf = params["we"].astype(jnp.bfloat16)
    w1_bf = params["w1"].astype(jnp.bfloat16)
    w2_bf = params["w2"].astype(jnp.bfloat16)
    feats = jnp.dot(x_flat.astype(jnp.bfloat16), we_bf,
                    preferred_element_type=jnp.float32) + params["be"]
    h = jnp.maximum(jnp.dot(feats.astype(jnp.bfloat16), w1_bf,
                            preferred_element_type=jnp.float32) + params["b1"], 0.0)
    ref = jnp.dot(h.astype(jnp.bfloat16), w2_bf,
                  preferred_element_type=jnp.float32) + params["b2"]

    assert out.shape == (B, N_OUT)
    assert jnp.allclose(out, ref, atol=1e-2, rtol=1e-2), (out, ref)

    print("KERNEL_OK")
</pallas_src>

<mosaic_0001>
module attributes {stable_mosaic.version = 11 : i64} {
  func.func @_clip_head_kernel(%arg0: i32, %arg1: i32, %arg2: memref<8x384xbf16, #tpu.memory_space<vmem>>, %arg3: memref<384x512xbf16, #tpu.memory_space<vmem>>, %arg4: memref<1x512xf32, #tpu.memory_space<vmem>>, %arg5: memref<512x512xbf16, #tpu.memory_space<vmem>>, %arg6: memref<1x512xf32, #tpu.memory_space<vmem>>, %arg7: memref<512x128xbf16, #tpu.memory_space<vmem>>, %arg8: memref<1x128xf32, #tpu.memory_space<vmem>>, %arg9: memref<8x128xf32, #tpu.memory_space<vmem>>, %arg10: memref<8x512xf32, #tpu.memory_space<vmem>>) attributes {dimension_semantics = [#tpu.dimension_semantics<parallel>, #tpu.dimension_semantics<arbitrary>], iteration_bounds = array<i64: 1, 2>, scalar_prefetch = 0 : i64, scratch_operands = 1 : i64, tpu.core_type = #tpu.core_type<tc>, window_params = [{transform_indices = @transform_0, window_bounds = array<i64: 8, 384>}, {transform_indices = @transform_1, window_bounds = array<i64: 384, 512>}, {pipeline_mode = #tpu.pipeline_mode<synchronous>, transform_indices = @transform_2, window_bounds = array<i64: 1, 512>}, {pipeline_mode = #tpu.pipeline_mode<synchronous>, transform_indices = @transform_3, window_bounds = array<i64: 512, 512>}, {pipeline_mode = #tpu.pipeline_mode<synchronous>, transform_indices = @transform_4, window_bounds = array<i64: 1, 512>}, {pipeline_mode = #tpu.pipeline_mode<synchronous>, transform_indices = @transform_5, window_bounds = array<i64: 512, 128>}, {pipeline_mode = #tpu.pipeline_mode<synchronous>, transform_indices = @transform_6, window_bounds = array<i64: 1, 128>}, {transform_indices = @transform_7, window_bounds = array<i64: 8, 128>}]} {
    %c0_i32 = arith.constant 0 : i32
    %0 = arith.cmpi eq, %arg1, %c0_i32 : i32
    %1 = arith.extui %0 : i1 to i32
    %c0_i32_0 = arith.constant 0 : i32
    %2 = arith.cmpi ne, %1, %c0_i32_0 : i32
    scf.if %2 {
      %cst_9 = arith.constant 0.000000e+00 : f32
      %12 = vector.broadcast %cst_9 : f32 to vector<8x512xf32>
      %c0_10 = arith.constant 0 : index
      %c0_11 = arith.constant 0 : index
      %13 = vector.load %arg10[%c0_10, %c0_11] : memref<8x512xf32, #tpu.memory_space<vmem>>, vector<8x512xf32>
      tpu.vector_store %arg10[%c0_10, %c0_11], %12 {strides = array<i32>} : memref<8x512xf32, #tpu.memory_space<vmem>>, vector<8x512xf32>,
    } else {
    }
    %c0 = arith.constant 0 : index
    %c0_1 = arith.constant 0 : index
    %3 = vector.load %arg10[%c0, %c0_1] : memref<8x512xf32, #tpu.memory_space<vmem>>, vector<8x512xf32>
    %c0_2 = arith.constant 0 : index
    %c0_3 = arith.constant 0 : index
    %4 = vector.load %arg2[%c0_2, %c0_3] : memref<8x384xbf16, #tpu.memory_space<vmem>>, vector<8x384xbf16>
    %c0_4 = arith.constant 0 : index
    %c0_5 = arith.constant 0 : index
    %5 = vector.load %arg3[%c0_4, %c0_5] : memref<384x512xbf16, #tpu.memory_space<vmem>>, vector<384x512xbf16>
    %cst = arith.constant dense<0.000000e+00> : vector<8x512xf32>
    %6 = tpu.matmul %4, %5, %cst {dimension_numbers = #tpu.dot_dimension_numbers<[1], [0], [0], [1], [0, 0, 1, 1], [], []>} : vector<8x384xbf16>, vector<384x512xbf16>, vector<8x512xf32> -> vector<8x512xf32>
    %7 = arith.addf %3, %6 : vector<8x512xf32>
    %c0_6 = arith.constant 0 : index
    %c0_7 = arith.constant 0 : index
    %8 = vector.load %arg10[%c0_6, %c0_7] : memref<8x512xf32, #tpu.memory_space<vmem>>, vector<8x512xf32>
    tpu.vector_store %arg10[%c0_6, %c0_7], %7 {strides = array<i32>} : memref<8x512xf32, #tpu.memory_space<vmem>>, vector<8x512xf32>,
    %c1_i32 = arith.constant 1 : i32
    %9 = arith.cmpi eq, %arg1, %c1_i32 : i32
    %10 = arith.extui %9 : i1 to i32
    %c0_i32_8 = arith.constant 0 : i32
    %11 = arith.cmpi ne, %10, %c0_i32_8 : i32
    scf.if %11 {
      %c0_9 = arith.constant 0 : index
      %c0_10 = arith.constant 0 : index
      %12 = vector.load %arg10[%c0_9, %c0_10] : memref<8x512xf32, #tpu.memory_space<vmem>>, vector<8x512xf32>
      %c0_11 = arith.constant 0 : index
      %c0_12 = arith.constant 0 : index
      %13 = vector.load %arg4[%c0_11, %c0_12] : memref<1x512xf32, #tpu.memory_space<vmem>>, vector<1x512xf32>
      %14 = vector.broadcast %13 : vector<1x512xf32> to vector<8x512xf32>
      %15 = arith.addf %12, %14 : vector<8x512xf32>
      %16 = arith.truncf %15 : vector<8x512xf32> to vector<8x512xbf16>
      %c0_13 = arith.constant 0 : index
      %c0_14 = arith.constant 0 : index
      %17 = vector.load %arg5[%c0_13, %c0_14] : memref<512x512xbf16, #tpu.memory_space<vmem>>, vector<512x512xbf16>
      %cst_15 = arith.constant dense<0.000000e+00> : vector<8x512xf32>
      %18 = tpu.matmul %16, %17, %cst_15 {dimension_numbers = #tpu.dot_dimension_numbers<[1], [0], [0], [1], [0, 0, 1, 1], [], []>} : vector<8x512xbf16>, vector<512x512xbf16>, vector<8x512xf32> -> vector<8x512xf32>
      %c0_16 = arith.constant 0 : index
      %c0_17 = arith.constant 0 : index
      %19 = vector.load %arg6[%c0_16, %c0_17] : memref<1x512xf32, #tpu.memory_space<vmem>>, vector<1x512xf32>
      %20 = vector.broadcast %19 : vector<1x512xf32> to vector<8x512xf32>
      %21 = arith.addf %18, %20 : vector<8x512xf32>
      %cst_18 = arith.constant 0.000000e+00 : f32
      %22 = vector.broadcast %cst_18 : f32 to vector<8x512xf32>
      %23 = arith.maximumf %21, %22 : vector<8x512xf32>
      %24 = arith.truncf %23 : vector<8x512xf32> to vector<8x512xbf16>
      %c0_19 = arith.constant 0 : index
      %c0_20 = arith.constant 0 : index
      %25 = vector.load %arg7[%c0_19, %c0_20] : memref<512x128xbf16, #tpu.memory_space<vmem>>, vector<512x128xbf16>
      %cst_21 = arith.constant dense<0.000000e+00> : vector<8x128xf32>
      %26 = tpu.matmul %24, %25, %cst_21 {dimension_numbers = #tpu.dot_dimension_numbers<[1], [0], [0], [1], [0, 0, 1, 1], [], []>} : vector<8x512xbf16>, vector<512x128xbf16>, vector<8x128xf32> -> vector<8x128xf32>
      %c0_22 = arith.constant 0 : index
      %c0_23 = arith.constant 0 : index
      %27 = vector.load %arg8[%c0_22, %c0_23] : memref<1x128xf32, #tpu.memory_space<vmem>>, vector<1x128xf32>
      %28 = vector.broadcast %27 : vector<1x128xf32> to vector<8x128xf32>
      %29 = arith.addf %26, %28 : vector<8x128xf32>
      %c0_24 = arith.constant 0 : index
      %c0_25 = arith.constant 0 : index
      %30 = vector.load %arg9[%c0_24, %c0_25] : memref<8x128xf32, #tpu.memory_space<vmem>>, vector<8x128xf32>
      tpu.vector_store %arg9[%c0_24, %c0_25], %29 {strides = array<i32>} : memref<8x128xf32, #tpu.memory_space<vmem>>, vector<8x128xf32>,
    } else {
    }
    return
  }
  func.func @transform_0(%arg0: i32, %arg1: i32) -> (i32, i32) {
    %c0_i32 = arith.constant 0 : i32
    return %arg0, %arg1 : i32, i32
  }
  func.func @transform_1(%arg0: i32, %arg1: i32) -> (i32, i32) {
    %c0_i32 = arith.constant 0 : i32
    %c0_i32_0 = arith.constant 0 : i32
    return %arg1, %c0_i32 : i32, i32
  }
  func.func @transform_2(%arg0: i32, %arg1: i32) -> (i32, i32) {
    %c0_i32 = arith.constant 0 : i32
    %c0_i32_0 = arith.constant 0 : i32
    %c0_i32_1 = arith.constant 0 : i32
    return %c0_i32, %c0_i32_0 : i32, i32
  }
  func.func @transform_3(%arg0: i32, %arg1: i32) -> (i32, i32) {
    %c0_i32 = arith.constant 0 : i32
    %c0_i32_0 = arith.constant 0 : i32
    %c0_i32_1 = arith.constant 0 : i32
    return %c0_i32, %c0_i32_0 : i32, i32
  }
  func.func @transform_4(%arg0: i32, %arg1: i32) -> (i32, i32) {
    %c0_i32 = arith.constant 0 : i32
    %c0_i32_0 = arith.constant 0 : i32
    %c0_i32_1 = arith.constant 0 : i32
    return %c0_i32, %c0_i32_0 : i32, i32
  }
  func.func @transform_5(%arg0: i32, %arg1: i32) -> (i32, i32) {
    %c0_i32 = arith.constant 0 : i32
    %c0_i32_0 = arith.constant 0 : i32
    %c0_i32_1 = arith.constant 0 : i32
    return %c0_i32, %c0_i32_0 : i32, i32
  }
  func.func @transform_6(%arg0: i32, %arg1: i32) -> (i32, i32) {
    %c0_i32 = arith.constant 0 : i32
    %c0_i32_0 = arith.constant 0 : i32
    %c0_i32_1 = arith.constant 0 : i32
    return %c0_i32, %c0_i32_0 : i32, i32
  }
  func.func @transform_7(%arg0: i32, %arg1: i32) -> (i32, i32) {
    %c0_i32 = arith.constant 0 : i32
    %c0_i32_0 = arith.constant 0 : i32
    return %arg0, %c0_i32 : i32, i32
  }
}

</mosaic_0001>

<bundles_post_ra>
// kernel: tpu_custom_call.1
= control target key start
LH: loop header
LB: loop body
LE: loop exit
PB: predicated region body
PF: predicated region fallthrough
CT: control target
= control target key end

     0   :  { %s4089_s0 = inlined_call_operand.hbm [shape: bf16[8,768], index: 0, kind: input, shape index: {}]   ;;  %s4090_s1 = inlined_call_operand.hbm [shape: bf16[768,512], index: 1, kind: input, shape index: {}]   ;;  %s4091_s2 = inlined_call_operand.vmem [shape: f32[1,512], index: 2, kind: input, shape index: {}]   ;;  %s4092_s3 = inlined_call_operand.hbm [shape: bf16[512,512], index: 3, kind: input, shape index: {}]   ;;  %s4093_s4 = inlined_call_operand.vmem [shape: f32[1,512], index: 4, kind: input, shape index: {}]   ;;  %s4094_s5 = inlined_call_operand.hbm [shape: bf16[512,128], index: 5, kind: input, shape index: {}]   ;;  %s4095_s6 = inlined_call_operand.vmem [shape: f32[1,128], index: 6, kind: input, shape index: {}]   ;;  %s4096_s7 = inlined_call_operand.hbm [shape: f32[8,128], index: 7, kind: output, shape index: {}]  }
   0x1   :  { %4102 = sst [smem:[#allocation17_spill]] %s4089_s0 }
   0x2   :  { %4103 = sst [smem:[#allocation18_spill]] %s4092_s3 }
   0x3   :  { %12 = vsyncpa [#allocation4], 0 }
   0x4   :  { %14 = vsyncpa [#allocation4 + $0x1], 0 }
   0x5   :  { %15 = vsyncpa [#allocation7], 0 }
   0x6   :  { %17 = vsyncpa [#allocation7 + $0x1], 0 }
   0x7   :  { %18 = vsyncpa [#allocation10], 0 }
   0x8   :  { %19 = vsyncpa [#allocation5], 0  ;;  %s3676_s24 = smov 0   ;;  %s3678_s25 = smov 0  }
   0x9   :  { %s3680_s26 = smov 0   ;;  %s3682_s27 = smov 0  }
   0xa   :  { %s3684_s28 = smov 0   ;;  %s3686_s29 = smov 0  }
   0xb LB: > { %s3705_s30 = sadd.s32 4294967295, %s3623_s29   ;;  %p59_p0 = scmp.ne.s32.totalorder %s3607_s25, %s3603_s24  ;;  %s3623_s29 = sphi %s3686_s29, %s25_s29   ;;  %s3619_s28 = sphi %s3684_s28, %s4122_s28   ;;  %s3615_s27 = sphi %s3682_s27, %s4121_s27   ;;  %s3611_s26 = sphi %s3680_s26, %s4120_s26   ;;  %s3607_s25 = sphi %s3678_s25, %s4119_s25   ;;  %s3603_s24 = sphi %s3676_s24, %s4118_s24  }
   0xc   : > { %p4097_p1 = scmp.eq.s32.totalorder %s3705_s30, 0  ;;  %p2610_p2 = scmp.ge.s32.totalorder %s3623_s29, 1 }
   0xd   : > { %p227_p3 = scmp.lt.s32.totalorder %s3623_s29, 3  ;;  %s3625_s10 = smov [#allocation8]  }
   0xe   : > { %p3713_p4 = por %p4097_p1, %p59_p0  ;;  %s242_s11 = sshll.u32 %s3625_s10, 4  ;;  %s243_s11 = int_to_ptr.vmem [resolvable:$true] %s242_s11 }
   0xf   : > { %p3717_p5 = pnand %p2610_p2, %p227_p3  ;;  %s3626_s13 = smov [#allocation9]  }
  0x10   : > { %s4104_s8 = scalar_select %p3713_p4, 1, 0 }
  0x11   : > { %s4105_s9 = scalar_select %p3717_p5, 1, 0 }
  0x12   : > { %p2966_p6 = pneg %p3717_p5  ;;  %s258_s14 = sshll.u32 %s3626_s13, 4  ;;  %s3729_s14 = int_to_ptr.vmem [resolvable:$true] %s258_s14 }
  0x13   : > { %s4107_s3 = sld [smem:[#allocation18_spill]] }
  0x14   : > { %p3725_p7 = pnand %p2966_p6, %p4097_p1 }
  0x16   : > { %p3417_p9 = pneg %p3725_p7 }
  0x19   : > { %s3415_s17 = scalar_lea.hbm %s4107_s3, 16384 }
  0x1a   : > { %p3416_p8 = scmp.ne.s32.totalorder %s4107_s3, %s3415_s17  ;;  %p3422_p12 = scmp.lt.u32.totalorder %s3415_s17, %s4107_s3 }
  0x1c   : > { %p3418_p10 = pnand %p3417_p9, %p3416_p8 }
  0x1e   : > { %p3419_p11 = pneg %p3418_p10 }
  0x20   : > { %p3424_p13 = pnand %p3422_p12, %p3419_p11 }
  0x22   : > { %3427 = shalt.err (!%p3424_p13)
}
  0x23   : > { %s3428_s22 = scalar_lea.vmem %s243_s11, 16384  ;;  %p3436_p6 = scmp.lt.s32.totalorder %s243_s11, %s243_s11 }
  0x24   : > { %p3429_p0 = scmp.ne.s32.totalorder %s243_s11, %s3428_s22  ;;  %p3437_p1 = scmp.lt.s32.totalorder %s3428_s22, %s3428_s22 }
  0x26   : > { %p3431_p2 = pnand %p3429_p0, %p3417_p9  ;;  %p3438_p4 = por %p3437_p1, %p3436_p6 }
  0x28   : > { %p3432_p3 = pneg %p3431_p2 }
  0x2a   : > { %p3439_p5 = pnand %p3438_p4, %p3432_p3 }
  0x2c   : > { %3442 = shalt.err (!%p3439_p5)
}
  0x2d   : > { %s4100_s23 = smov 256   ;;  %s4101_s24 = smov 16  }
  0x2e   : > { %2969 = dma.hbm_to_vmem [thread:$0]  (!%p3725_p7), %s4107_s3, 16384, %s243_s11, [#allocation7], %s4100_s23, %s4100_s23, %s4101_s24  }
  0x2f   : > { %s3443_s17 = scalar_lea.hbm %s4094_s5, 4096 }
  0x30   : > { %p3444_p1 = scmp.ne.s32.totalorder %s4094_s5, %s3443_s17  ;;  %p3450_p8 = scmp.lt.u32.totalorder %s3443_s17, %s4094_s5 }
  0x32   : > { %p3446_p4 = pnand %p3444_p1, %p3417_p9 }
  0x34   : > { %p3447_p5 = pneg %p3446_p4 }
  0x36   : > { %p3452_p10 = pnand %p3450_p8, %p3447_p5 }
  0x38   : > { %3455 = shalt.err (!%p3452_p10)
}
  0x39   : > { %s3456_s11 = scalar_lea.vmem %s3729_s14, 4096  ;;  %p3464_p0 = scmp.lt.s32.totalorder %s3729_s14, %s3729_s14 }
  0x3a   : > { %p3457_p11 = scmp.ne.s32.totalorder %s3729_s14, %s3456_s11  ;;  %p3465_p2 = scmp.lt.s32.totalorder %s3456_s11, %s3456_s11 }
  0x3c   : > { %p3459_p12 = pnand %p3457_p11, %p3417_p9  ;;  %p3466_p3 = por %p3465_p2, %p3464_p0 }
  0x3e   : > { %p3460_p13 = pneg %p3459_p12 }
  0x40   : > { %p3467_p6 = pnand %p3466_p3, %p3460_p13 }
  0x42   : > { %3470 = shalt.err (!%p3467_p6)
}
  0x43   : > { %s3629_s22 = smov 64   ;;  %s3630_s10 = smov 4  }
  0x44   : > { %2972 = dma.hbm_to_vmem [thread:$0]  (!%p3725_p7), %s4094_s5, 4096, %s3729_s14, [#allocation10], %s3629_s22, %s3629_s22, %s3630_s10  }
  0x45   : > { %s34_s16 = sadd.s32 1, %s3619_s28  ;;  %s46_s17 = sadd.s32 1, %s3611_s26 }
  0x46   : > { %p35_p9 = scmp.ge.s32.totalorder %s34_s16, 2  ;;  %p53_p1 = scmp.ne.s32.totalorder %s3611_s26, %s3607_s25 }
  0x47   : > { %p54_p4 = scmp.eq.s32.totalorder %s3623_s29, 0  ;;  %p2982_p5 = scmp.lt.s32.totalorder %s3623_s29, 2 }
  0x48   : > { %s4124_s16 = smov (%p35_p9, %s34_s16), 0  ;;  %s3790_s18 = sand.u32 1, %s3611_s26  }
  0x49   : > { %p55_p8 = por %p54_p4, %p53_p1  ;;  %s42_s12 = ssub.s32 %s3619_s28, %s4124_s16 }
  0x4a   : > { %p44_p10 = scmp.eq.s32.totalorder %s42_s12, 0  ;;  %s2946_s19 = smul.u32 12, %s3790_s18 }
  0x4b   : > { %s2886_s20 = smul.u32 192, %s3619_s28  ;;  %p3796_p7 = pnand %p2982_p5, %p55_p8 }
  0x4c   : > { %s3801_s21 = scalar_select %p44_p10, %s3611_s26, %s46_s17  }
  0x4d   : > { %s4109_s0 = sld [smem:[#allocation17_spill]]  ;;  %s279_s13 = scalar_lea.vmem [#allocation3], %s2946_s19 }
  0x4e   : > { %s289_s15 = sshll.u32 %s279_s13, 4  ;;  %s2947_s12 = smul.u32 768, %s3790_s18  ;;  %s3808_s15 = int_to_ptr.vmem [resolvable:$true] %s289_s15 }
  0x4f   : > { %s276_s23 = scalar_lea.sflag [#allocation4], %s3790_s18  ;;  %p3473_p12 = pneg %p3796_p7 }
  0x53   : > { %s3806_s10 = scalar_lea.hbm %s4109_s0, %s2886_s20  ;;  %s3476_s11 = scalar_lea.hbm %s4109_s0, 384 }
  0x54   : > { %s3471_s24 = scalar_lea.hbm %s3806_s10, 192  ;;  %p3477_p2 = scmp.lt.u32.totalorder %s3806_s10, %s4109_s0 }
  0x55   : > { %p3472_p11 = scmp.ne.s32.totalorder %s3806_s10, %s3471_s24  ;;  %p3478_p3 = scmp.lt.u32.totalorder %s3476_s11, %s3471_s24 }
  0x56   : > { %p3480_p9 = scmp.lt.u32.totalorder %s3471_s24, %s3806_s10 }
  0x57   : > { %p3474_p13 = pnand %p3473_p12, %p3472_p11  ;;  %p3479_p6 = por %p3478_p3, %p3477_p2 }
  0x59   : > { %p3475_p0 = pneg %p3474_p13  ;;  %p3481_p1 = por %p3480_p9, %p3479_p6 }
  0x5b   : > { %p3482_p4 = pnand %p3481_p1, %p3475_p0 }
  0x5d   : > { %3485 = shalt.err (!%p3482_p4)
}
  0x5e   : > { %s3486_s19 = scalar_lea.vmem %s3808_s15, 192  ;;  %s3631_s13 = smov [#allocation3]  }
  0x5f   : > { %p3487_p5 = scmp.ne.s32.totalorder %s3808_s15, %s3486_s19  ;;  %s3491_s17 = sshll.u32 %s3631_s13, 4  ;;  %s3492_s17 = int_to_ptr.vmem [resolvable:$false] %s3491_s17 }
  0x60   : > { %s3493_s3 = scalar_lea.vmem %s3492_s17, 384  ;;  %p3494_p11 = scmp.lt.s32.totalorder %s3808_s15, %s3492_s17 }
  0x61   : > { %p3489_p8 = pnand %p3487_p5, %p3473_p12  ;;  %p3495_p13 = scmp.lt.s32.totalorder %s3493_s3, %s3486_s19 }
  0x63   : > { %p3490_p10 = pneg %p3489_p8  ;;  %p3496_p2 = por %p3495_p13, %p3494_p11 }
  0x65   : > { %p3497_p3 = pnand %p3496_p2, %p3490_p10 }
  0x67   : > { %3500 = shalt.err (!%p3497_p3)
}
  0x68   : > { %2976 = dma.hbm_to_vmem [thread:$0]  (!%p3796_p7), %s3806_s10, 192, %s3808_s15, %s276_s23  }
  0x69   : > { %s2889_s24 = smul.u32 12288, %s3619_s28  ;;  %s300_s20 = scalar_lea.vmem [#allocation6], %s2947_s12 }
  0x6a   : > { %s308_s11 = sshll.u32 %s300_s20, 4  ;;  %s296_s22 = sand.u32 1, %s3623_s29   ;;  %s3841_s11 = int_to_ptr.vmem [resolvable:$true] %s308_s11 }
  0x6b   : > { %s3846_s17 = scalar_lea.hbm %s4090_s1, %s2889_s24  ;;  %s3848_s3 = scalar_lea.sflag [#allocation7], %s296_s22 }
  0x6c   : > { %s3501_s0 = scalar_lea.hbm %s3846_s17, 12288  ;;  %s3506_s10 = scalar_lea.hbm %s4090_s1, 24576 }
  0x6d   : > { %p3502_p0 = scmp.ne.s32.totalorder %s3846_s17, %s3501_s0  ;;  %p3507_p1 = scmp.lt.u32.totalorder %s3846_s17, %s4090_s1 }
  0x6e   : > { %p3508_p4 = scmp.lt.u32.totalorder %s3506_s10, %s3501_s0  ;;  %p3510_p8 = scmp.lt.u32.totalorder %s3501_s0, %s3846_s17 }
  0x6f   : > { %p3504_p6 = pnand %p3502_p0, %p3473_p12 }
  0x70   : > { %p3509_p5 = por %p3508_p4, %p3507_p1 }
  0x71   : > { %p3505_p9 = pneg %p3504_p6 }
  0x72   : > { %p3511_p10 = por %p3510_p8, %p3509_p5 }
  0x74   : > { %p3512_p11 = pnand %p3511_p10, %p3505_p9 }
  0x76   : > { %3515 = shalt.err (!%p3512_p11)
}
  0x77   : > { %s3516_s24 = scalar_lea.vmem %s3841_s11, 12288  ;;  %s3632_s20 = smov [#allocation6]  }
  0x78   : > { %p3517_p13 = scmp.ne.s32.totalorder %s3841_s11, %s3516_s24  ;;  %s3521_s22 = sshll.u32 %s3632_s20, 4  ;;  %s3522_s22 = int_to_ptr.vmem [resolvable:$false] %s3521_s22 }
  0x79   : > { %s3523_s19 = scalar_lea.vmem %s3522_s22, 24576  ;;  %p3524_p0 = scmp.lt.s32.totalorder %s3841_s11, %s3522_s22 }
  0x7a   : > { %p3519_p2 = pnand %p3517_p13, %p3473_p12  ;;  %p3525_p6 = scmp.lt.s32.totalorder %s3523_s19, %s3516_s24 }
  0x7c   : > { %p3520_p3 = pneg %p3519_p2  ;;  %p3526_p1 = por %p3525_p6, %p3524_p0 }
  0x7e   : > { %p3527_p4 = pnand %p3526_p1, %p3520_p3 }
  0x80   : > { %3530 = shalt.err (!%p3527_p4)
}
  0x81   : > { %s4110_s0 = smov 16   ;;  %s4111_s13 = smov 256  }
  0x82   : > { %2979 = dma.hbm_to_vmem [thread:$0]  (!%p3796_p7), %s3846_s17, 12288, %s3841_s11, %s3848_s3, %s4111_s13, %s4111_s13, %s4110_s0  }
  0x83   : > { %p4112_p12 = scmp.ne.s32.totalorder %s4105_s9, 0 }
  0x84   : > { %s322_s23 = sand.u32 (!%p4112_p12), 1, %s3607_s25   ;;  %p4113_p9 = scmp.ne.s32.totalorder (!%p4112_p12), %s4104_s8, 0 }
  0x85   : > { %320 = sbr.rel (%p4112_p12) target bundleno = 1022 (0x3fe), region = 48  ;;  %s323_s10 = scalar_lea.sflag (!%p4112_p12), [#allocation4], %s322_s23 }
  0x86   : > { %s2948_s18 = smul.u32 (!%p4112_p12), 12, %s322_s23 }
  0x88   : > { %s3880_s15 = scalar_lea.vmem (!%p4112_p12), [#allocation3], %s2948_s18 }
  0x8c   : > { %3582 = dma.done.wait (%p4113_p9), %s323_s10, 192  }
  0x8d   : > { %3584 = vsyncadd (%p4113_p9), %s323_s10, 4294967104  ;;  %s331_s14 = sand.u32 1, %s3705_s30   ;;  %s2949_s12 = smul.u32 768, %s322_s23 }
  0x8e   : > { %s332_s11 = scalar_lea.sflag [#allocation7], %s331_s14 }
  0x8f   : > { %s3887_s17 = scalar_lea.vmem [#allocation6], %s2949_s12 }
  0x90   : > { %3586 = dma.done.wait (%p4113_p9), %s332_s11, 12288  }
  0x91   : > { %3588 = vsyncadd (%p4113_p9), %s332_s11, 4294955008  ;;  %p4114_p7 = scmp.eq.s32.totalorder %s3705_s30, 0 }
  0x93   : > { %3590 = dma.done.wait (%p4114_p7), [#allocation7], 16384   ;;  %p4115_p5 = pmov %p4114_p7 }
  0x95   : > { %3592 = vsyncadd (%p4115_p5), [#allocation7], 4294950912  ;;  %p4116_p8 = pmov %p4115_p5 }
  0x96   : > { %p4117_p10 = pmov %p4115_p5 }
  0x97   : > { %3594 = dma.done.wait (%p4116_p8), [#allocation10], 4096  }
  0x98   : > { %3596 = vsyncadd (%p4117_p10), [#allocation10], 4294963200  ;;  %p2620_p11 = scmp.ne.s32.totalorder %s3615_s27, 0 }
  0x99   : > { %v3633_v0 = vmov (!%p2620_p11), 0.0  }
  0x9a   : > { %380 = sbr.rel (%p2620_p11) target bundleno = 161 (0xa1), region = 68  ;;  %381 = vst [vmem:[#allocation2] sm:$0xff] (!%p2620_p11), %v3633_v0  ;;  %382 = vst [vmem:[#allocation2 + $0x8] sm:$0xff] (!%p2620_p11), %v3633_v0 }
  0x9b   : > { %383 = vst [vmem:[#allocation2 + $0x10] sm:$0xff] (!%p2620_p11), %v3633_v0  ;;  %384 = vst [vmem:[#allocation2 + $0x18] sm:$0xff] (!%p2620_p11), %v3633_v0 }
  0xa1 PF: > { %v3044_v1 = vld [vmem:[%s3887_s17 + $0x4] ss:$16 sps:$4 sm:$0xff]   ;;  %v3634_v3 = vmov 0   ;;  %v3048_v4 = vld [vmem:[%s3887_s17] ss:$16 sps:$4 sm:$0xff]   ;;  %p2720_p13 = scmp.ne.s32.totalorder %s3615_s27, 1 }
  0xa2   : > { %v3046_v2 = vld [vmem:[%s3887_s17 + $0x204] ss:$16 sps:$4 sm:$0xff]   ;;  %1051 = vmatprep.mubr.bf16.mxu1 %v3634_v3  ;;  %978 = vmatprep.subr.bf16.mxu0 %v3044_v1  ;;  %v3049_v5 = vld [vmem:[%s3887_s17 + $0x200] ss:$16 sps:$4 sm:$0xff]   ;;  %v3097_v35 = vld [vmem:[%s3887_s17 + $0xc] ss:$16 sps:$4 sm:$0xff]  }
  0xa3   : > { %1019 = vmatprep.subr.bf16.mxu1 %v3046_v2  ;;  %v3050_v6 = vld [vmem:[%s3887_s17 + $0x24] ss:$16 sps:$4 sm:$0xff]   ;;  %979 = vmatpush1.bf16.msra.mxu0 %v3048_v4  ;;  %v3054_v8 = vld [vmem:[%s3887_s17 + $0x20] ss:$16 sps:$4 sm:$0xff]   ;;  %v3095_v37 = vld [vmem:[%s3887_s17 + $0x8] ss:$16 sps:$4 sm:$0xff]  }
  0xa4   : > { %1020 = vmatpush1.bf16.msra.mxu1 %v3049_v5  ;;  %v3052_v7 = vld [vmem:[%s3887_s17 + $0x224] ss:$16 sps:$4 sm:$0xff]   ;;  %980 = vmatprep.subr.bf16.mxu0 %v3050_v6  ;;  %v3055_v9 = vld [vmem:[%s3887_s17 + $0x220] ss:$16 sps:$4 sm:$0xff]   ;;  %v3103_v40 = vld [vmem:[%s3887_s17 + $0x2c] ss:$16 sps:$4 sm:$0xff]  }
  0xa5   : > { %1021 = vmatprep.subr.bf16.mxu1 %v3052_v7  ;;  %v3056_v10 = vld [vmem:[%s3887_s17 + $0x44] ss:$16 sps:$4 sm:$0xff]   ;;  %v3060_v12 = vld [vmem:[%s3887_s17 + $0x40] ss:$16 sps:$4 sm:$0xff]   ;;  %v3101_v41 = vld [vmem:[%s3887_s17 + $0x28] ss:$16 sps:$4 sm:$0xff]  }
  0xa6   : > { %v3058_v11 = vld [vmem:[%s3887_s17 + $0x244] ss:$16 sps:$4 sm:$0xff]   ;;  %v3061_v13 = vld [vmem:[%s3887_s17 + $0x240] ss:$16 sps:$4 sm:$0xff]   ;;  %v3109_v44 = vld [vmem:[%s3887_s17 + $0x4c] ss:$16 sps:$4 sm:$0xff]  }
  0xa7   : > { %981 = vmatpush1.bf16.msra.mxu0 %v3054_v8  ;;  %v3062_v14 = vld [vmem:[%s3887_s17 + $0x64] ss:$16 sps:$4 sm:$0xff]   ;;  %v3066_v16 = vld [vmem:[%s3887_s17 + $0x60] ss:$16 sps:$4 sm:$0xff]   ;;  %v3107_v45 = vld [vmem:[%s3887_s17 + $0x48] ss:$16 sps:$4 sm:$0xff]  }
  0xa8   : > { %1022 = vmatpush1.bf16.msra.mxu1 %v3055_v9  ;;  %982 = vmatprep.subr.bf16.mxu0 %v3056_v10  ;;  %v3064_v15 = vld [vmem:[%s3887_s17 + $0x264] ss:$16 sps:$4 sm:$0xff]   ;;  %v3067_v17 = vld [vmem:[%s3887_s17 + $0x260] ss:$16 sps:$4 sm:$0xff]   ;;  %v3115_v48 = vld [vmem:[%s3887_s17 + $0x6c] ss:$16 sps:$4 sm:$0xff]  }
  0xa9   : > { %1023 = vmatprep.subr.bf16.mxu1 %v3058_v11  ;;  %v3068_v18 = vld [vmem:[%s3887_s17 + $0x84] ss:$16 sps:$4 sm:$0xff]   ;;  %v3072_v20 = vld [vmem:[%s3887_s17 + $0x80] ss:$16 sps:$4 sm:$0xff]   ;;  %v3113_v49 = vld [vmem:[%s3887_s17 + $0x68] ss:$16 sps:$4 sm:$0xff]  }
  0xaa   : > { %v3070_v19 = vld [vmem:[%s3887_s17 + $0x284] ss:$16 sps:$4 sm:$0xff]   ;;  %v3073_v21 = vld [vmem:[%s3887_s17 + $0x280] ss:$16 sps:$4 sm:$0xff]   ;;  %v3121_v54 = vld [vmem:[%s3887_s17 + $0x8c] ss:$16 sps:$4 sm:$0xff]  }
  0xab   : > { %983 = vmatpush1.bf16.msra.mxu0 %v3060_v12  ;;  %v3074_v22 = vld [vmem:[%s3887_s17 + $0xa4] ss:$16 sps:$4 sm:$0xff]   ;;  %v3078_v24 = vld [vmem:[%s3887_s17 + $0xa0] ss:$16 sps:$4 sm:$0xff]   ;;  %v3119_v55 = vld [vmem:[%s3887_s17 + $0x88] ss:$16 sps:$4 sm:$0xff]  }
  0xac   : > { %1024 = vmatpush1.bf16.msra.mxu1 %v3061_v13  ;;  %984 = vmatprep.subr.bf16.mxu0 %v3062_v14  ;;  %v3076_v23 = vld [vmem:[%s3887_s17 + $0x2a4] ss:$16 sps:$4 sm:$0xff]   ;;  %v3079_v25 = vld [vmem:[%s3887_s17 + $0x2a0] ss:$16 sps:$4 sm:$0xff]   ;;  %v3127_v58 = vld [vmem:[%s3887_s17 + $0xac] ss:$16 sps:$4 sm:$0xff]  }
  0xad   : > { %1025 = vmatprep.subr.bf16.mxu1 %v3064_v15  ;;  %v3080_v26 = vld [vmem:[%s3887_s17 + $0xc4] ss:$16 sps:$4 sm:$0xff]   ;;  %v3084_v28 = vld [vmem:[%s3887_s17 + $0xc0] ss:$16 sps:$4 sm:$0xff]   ;;  %v3125_v59 = vld [vmem:[%s3887_s17 + $0xa8] ss:$16 sps:$4 sm:$0xff]  }
  0xae   : > { %v3082_v27 = vld [vmem:[%s3887_s17 + $0x2c4] ss:$16 sps:$4 sm:$0xff]   ;;  %v3085_v29 = vld [vmem:[%s3887_s17 + $0x2c0] ss:$16 sps:$4 sm:$0xff]   ;;  %v3133_v62 = vld [vmem:[%s3887_s17 + $0xcc] ss:$16 sps:$4 sm:$0xff]  }
  0xaf   : > { %985 = vmatpush1.bf16.msra.mxu0 %v3066_v16  ;;  %v3086_v30 = vld [vmem:[%s3887_s17 + $0xe4] ss:$16 sps:$4 sm:$0xff]   ;;  %v3090_v32 = vld [vmem:[%s3887_s17 + $0xe0] ss:$16 sps:$4 sm:$0xff]   ;;  %v3131_v63 = vld [vmem:[%s3887_s17 + $0xc8] ss:$16 sps:$4 sm:$0xff]  }
  0xb0   : > { %1026 = vmatpush1.bf16.msra.mxu1 %v3067_v17  ;;  %986 = vmatprep.subr.bf16.mxu0 %v3068_v18  ;;  %v3088_v31 = vld [vmem:[%s3887_s17 + $0x2e4] ss:$16 sps:$4 sm:$0xff]   ;;  %v3091_v33 = vld [vmem:[%s3887_s17 + $0x2e0] ss:$16 sps:$4 sm:$0xff]   ;;  %v3139_v2 = vld [vmem:[%s3887_s17 + $0xec] ss:$16 sps:$4 sm:$0xff]  }
  0xb1   : > { %1027 = vmatprep.subr.bf16.mxu1 %v3070_v19  ;;  %v3092_v34 = vld [vmem:[%s3887_s17 + $0x104] ss:$16 sps:$4 sm:$0xff]   ;;  %v3938_v36 = vld [vmem:[%s3880_s15 + $0x8] ss:$0 sps:$4 sm:$0xff]   ;;  %v3137_v4 = vld [vmem:[%s3887_s17 + $0xe8] ss:$16 sps:$4 sm:$0xff]  }
  0xb2   : > { %v3098_v38 = vld [vmem:[%s3887_s17 + $0x100] ss:$16 sps:$4 sm:$0xff]   ;;  %v3099_v39 = vld [vmem:[%s3887_s17 + $0x124] ss:$16 sps:$4 sm:$0xff]   ;;  %v3145_v6 = vld [vmem:[%s3887_s17 + $0x10c] ss:$16 sps:$4 sm:$0xff]  }
  0xb3   : > { %987 = vmatpush1.bf16.msra.mxu0 %v3072_v20  ;;  %v3104_v42 = vld [vmem:[%s3887_s17 + $0x120] ss:$16 sps:$4 sm:$0xff]   ;;  %v3105_v43 = vld [vmem:[%s3887_s17 + $0x144] ss:$16 sps:$4 sm:$0xff]   ;;  %v3148_v7 = vld [vmem:[%s3887_s17 + $0x20c] ss:$16 sps:$4 sm:$0xff]  }
  0xb4   : > { %1028 = vmatpush1.bf16.msra.mxu1 %v3073_v21  ;;  %988 = vmatprep.subr.bf16.mxu0 %v3074_v22  ;;  %v3110_v46 = vld [vmem:[%s3887_s17 + $0x140] ss:$16 sps:$4 sm:$0xff]   ;;  %v3111_v47 = vld [vmem:[%s3887_s17 + $0x164] ss:$16 sps:$4 sm:$0xff]   ;;  %v3143_v9 = vld [vmem:[%s3887_s17 + $0x108] ss:$16 sps:$4 sm:$0xff]  }
  0xb5   : > { %1029 = vmatprep.subr.bf16.mxu1 %v3076_v23  ;;  %v389_v50 = vld [vmem:[%s3880_s15] sm:$0xff]  ;;  %v3116_v51 = vld [vmem:[%s3887_s17 + $0x160] ss:$16 sps:$4 sm:$0xff]  }
  0xb6   : > { %v3117_v52 = vld [vmem:[%s3887_s17 + $0x184] ss:$16 sps:$4 sm:$0xff]   ;;  %v2622_v53 = vcombine.high %v389_v50, %v389_v50  ;;  %v3122_v56 = vld [vmem:[%s3887_s17 + $0x180] ss:$16 sps:$4 sm:$0xff]   ;;  %v3974_v8 = vcombine.low %v389_v50, %v389_v50  ;;  %v3146_v10 = vld [vmem:[%s3887_s17 + $0x208] ss:$16 sps:$4 sm:$0xff]  }
  0xb7   : > { %989 = vmatpush1.bf16.msra.mxu0 %v3078_v24  ;;  %v3123_v57 = vld [vmem:[%s3887_s17 + $0x1a4] ss:$16 sps:$4 sm:$0xff]   ;;  %v3128_v60 = vld [vmem:[%s3887_s17 + $0x1a0] ss:$16 sps:$4 sm:$0xff]   ;;  %v3151_v11 = vld [vmem:[%s3887_s17 + $0x12c] ss:$16 sps:$4 sm:$0xff]  }
  0xb8   : > { %1030 = vmatpush1.bf16.msra.mxu1 %v3079_v25  ;;  %990 = vmatprep.subr.bf16.mxu0 %v3080_v26  ;;  %v3129_v61 = vld [vmem:[%s3887_s17 + $0x1c4] ss:$16 sps:$4 sm:$0xff]   ;;  %v3134_v0 = vld [vmem:[%s3887_s17 + $0x1c0] ss:$16 sps:$4 sm:$0xff]   ;;  %v3154_v12 = vld [vmem:[%s3887_s17 + $0x22c] ss:$16 sps:$4 sm:$0xff]  }
  0xb9   : > { %1031 = vmatprep.subr.bf16.mxu1 %v3082_v27  ;;  %1010 = vmatprep.mubr.bf16.mxu0 %v2622_v53  ;;  %v3135_v1 = vld [vmem:[%s3887_s17 + $0x1e4] ss:$16 sps:$4 sm:$0xff]   ;;  %v3140_v5 = vld [vmem:[%s3887_s17 + $0x1e0] ss:$16 sps:$4 sm:$0xff]   ;;  %v3149_v13 = vld [vmem:[%s3887_s17 + $0x128] ss:$16 sps:$4 sm:$0xff]  }
  0xba   : > { %v3152_v14 = vld [vmem:[%s3887_s17 + $0x228] ss:$16 sps:$4 sm:$0xff]   ;;  %v3157_v15 = vld [vmem:[%s3887_s17 + $0x14c] ss:$16 sps:$4 sm:$0xff]  }
  0xbb   : > { %991 = vmatpush1.bf16.msra.mxu0 %v3084_v28  ;;  %v3160_v16 = vld [vmem:[%s3887_s17 + $0x24c] ss:$16 sps:$4 sm:$0xff]   ;;  %v3155_v17 = vld [vmem:[%s3887_s17 + $0x148] ss:$16 sps:$4 sm:$0xff]  }
  0xbc   : > { %1032 = vmatpush1.bf16.msra.mxu1 %v3085_v29  ;;  %992 = vmatprep.subr.bf16.mxu0 %v3086_v30  ;;  %v3158_v18 = vld [vmem:[%s3887_s17 + $0x248] ss:$16 sps:$4 sm:$0xff]   ;;  %v3163_v19 = vld [vmem:[%s3887_s17 + $0x16c] ss:$16 sps:$4 sm:$0xff]  }
  0xbd   : > { %1033 = vmatprep.subr.bf16.mxu1 %v3088_v31  ;;  %v3166_v20 = vld [vmem:[%s3887_s17 + $0x26c] ss:$16 sps:$4 sm:$0xff]   ;;  %v3161_v21 = vld [vmem:[%s3887_s17 + $0x168] ss:$16 sps:$4 sm:$0xff]  }
  0xbe   : > { %v3164_v22 = vld [vmem:[%s3887_s17 + $0x268] ss:$16 sps:$4 sm:$0xff]   ;;  %v3172_v23 = vld [vmem:[%s3887_s17 + $0x28c] ss:$16 sps:$4 sm:$0xff]  }
  0xbf   : > { %993 = vmatpush1.bf16.msra.mxu0 %v3090_v32  ;;  %v3167_v24 = vld [vmem:[%s3887_s17 + $0x188] ss:$16 sps:$4 sm:$0xff]   ;;  %v3175_v26 = vld [vmem:[%s3887_s17 + $0x1ac] ss:$16 sps:$4 sm:$0xff]  }
  0xc0   : > { %1034 = vmatpush1.bf16.msra.mxu1 %v3091_v33  ;;  %994 = vmatprep.subr.bf16.mxu0 %v3092_v34  ;;  %v3170_v25 = vld [vmem:[%s3887_s17 + $0x288] ss:$16 sps:$4 sm:$0xff]   ;;  %v3178_v27 = vld [vmem:[%s3887_s17 + $0x2ac] ss:$16 sps:$4 sm:$0xff]  }
  0xc1   : > { %1060 = vmatprep.subr.bf16.mxu1 %v3097_v35  ;;  %v3173_v28 = vld [vmem:[%s3887_s17 + $0x1a8] ss:$16 sps:$4 sm:$0xff]   ;;  %v3181_v30 = vld [vmem:[%s3887_s17 + $0x1cc] ss:$16 sps:$4 sm:$0xff]  }
  0xc2   : > { %v3176_v29 = vld [vmem:[%s3887_s17 + $0x2a8] ss:$16 sps:$4 sm:$0xff]   ;;  %v3184_v31 = vld [vmem:[%s3887_s17 + $0x2cc] ss:$16 sps:$4 sm:$0xff]  }
  0xc3   : > { %1052 = vmatmul.mubr.bf16.vlgmr.msra.gmra.mrb[0].mxu1 %v3938_v36  ;;  %995 = vmatpush1.bf16.msra.mxu0 %v3098_v38  ;;  %v3179_v32 = vld [vmem:[%s3887_s17 + $0x1c8] ss:$16 sps:$4 sm:$0xff]   ;;  %v3187_v34 = vld [vmem:[%s3887_s17 + $0x1ec] ss:$16 sps:$4 sm:$0xff]  }
  0xc4   : > { %1061 = vmatpush1.bf16.msra.mxu1 %v3095_v37  ;;  %996 = vmatprep.subr.bf16.mxu0 %v3099_v39  ;;  %v3182_v33 = vld [vmem:[%s3887_s17 + $0x2c8] ss:$16 sps:$4 sm:$0xff]   ;;  %v3190_v35 = vld [vmem:[%s3887_s17 + $0x2ec] ss:$16 sps:$4 sm:$0xff]  }
  0xc5   : > { %1062 = vmatprep.subr.bf16.mxu1 %v3103_v40  ;;  %1092 = vmatprep.mubr.bf16.mxu1 %v2622_v53  ;;  %v3185_v37 = vld [vmem:[%s3887_s17 + $0x1e8] ss:$16 sps:$4 sm:$0xff]  }
  0xc6   : > { %v3188_v38 = vld [vmem:[%s3887_s17 + $0x2e8] ss:$16 sps:$4 sm:$0xff]  }
  0xc7   : > { %997 = vmatpush1.bf16.msra.mxu0 %v3104_v42 }
  0xc8   : > { %1063 = vmatpush1.bf16.msra.mxu1 %v3101_v41  ;;  %998 = vmatprep.subr.bf16.mxu0 %v3105_v43  ;;  %v385_v43 = vld [vmem:[#allocation2] sm:$0xff] }
  0xc9   : > { %1064 = vmatprep.subr.bf16.mxu1 %v3109_v44 }
  0xcb   : > { %999 = vmatpush1.bf16.msra.mxu0 %v3110_v46  ;;  %v386_v46 = vld [vmem:[#allocation2 + $0x8] sm:$0xff] }
  0xcc   : > { %1065 = vmatpush1.bf16.msra.mxu1 %v3107_v45  ;;  %1000 = vmatprep.subr.bf16.mxu0 %v3111_v47 }
  0xcd   : > { %1066 = vmatprep.subr.bf16.mxu1 %v3115_v48 }
  0xcf   : > { %1001 = vmatpush1.bf16.msra.mxu0 %v3116_v51 }
  0xd0   : > { %1067 = vmatpush1.bf16.msra.mxu1 %v3113_v49  ;;  %1002 = vmatprep.subr.bf16.mxu0 %v3117_v52 }
  0xd1   : > { %1068 = vmatprep.subr.bf16.mxu1 %v3121_v54  ;;  %v387_v54 = vld [vmem:[#allocation2 + $0x10] sm:$0xff] }
  0xd3   : > { %1003 = vmatpush1.bf16.msra.mxu0 %v3122_v56 }
  0xd4   : > { %1069 = vmatpush1.bf16.msra.mxu1 %v3119_v55  ;;  %1004 = vmatprep.subr.bf16.mxu0 %v3123_v57  ;;  %v388_v57 = vld [vmem:[#allocation2 + $0x18] sm:$0xff] }
  0xd5   : > { %1070 = vmatprep.subr.bf16.mxu1 %v3127_v58 }
  0xd7   : > { %1005 = vmatpush1.bf16.msra.mxu0 %v3128_v60 }
  0xd8   : > { %1071 = vmatpush1.bf16.msra.mxu1 %v3125_v59  ;;  %1006 = vmatprep.subr.bf16.mxu0 %v3129_v61 }
  0xd9   : > { %1072 = vmatprep.subr.bf16.mxu1 %v3133_v62 }
  0xdb   : > { %1007 = vmatpush1.bf16.msra.mxu0 %v3134_v0 }
  0xdc   : > { %1073 = vmatpush1.bf16.msra.mxu1 %v3131_v63  ;;  %1008 = vmatprep.subr.bf16.mxu0 %v3135_v1 }
  0xdd   : > { %1074 = vmatprep.subr.bf16.mxu1 %v3139_v2  ;;  %v3191_v2 = vld [vmem:[#allocation8 + $0x4] ss:$16 sps:$4 sm:$0xff] (!%p2720_p13)  }
  0xdf   : > { %1009 = vmatpush1.bf16.msra.mxu0 %v3140_v5  ;;  %v3195_v5 = vld [vmem:[#allocation8] ss:$16 sps:$4 sm:$0xff] (!%p2720_p13)  }
  0xe0   : > { %1075 = vmatpush1.bf16.msra.mxu1 %v3137_v4  ;;  %1101 = vmatprep.subr.bf16.mxu0 %v3148_v7  ;;  %v3193_v4 = vld [vmem:[#allocation8 + $0xc] ss:$16 sps:$4 sm:$0xff] (!%p2720_p13)   ;;  %v3197_v7 = vld [vmem:[#allocation8 + $0x24] ss:$16 sps:$4 sm:$0xff] (!%p2720_p13)  }
  0xe1   : > { %1076 = vmatprep.subr.bf16.mxu1 %v3145_v6  ;;  %v3196_v6 = vld [vmem:[#allocation8 + $0x8] ss:$16 sps:$4 sm:$0xff] (!%p2720_p13)  }
  0xe2   : > { %1011 = vmatmul.mubr.bf16.vlgmr.msra.gmra.mrb[0].mxu0 %v3974_v8 }
  0xe3   : > { %1102 = vmatpush1.bf16.msra.mxu0 %v3146_v10  ;;  %1133 = vmatprep.mubr.bf16.mxu0 %v3634_v3  ;;  %v3169_v3 = vld [vmem:[%s3887_s17 + $0x18c] ss:$16 sps:$4 sm:$0xff]   ;;  %v3202_v10 = vld [vmem:[#allocation8 + $0x28] ss:$16 sps:$4 sm:$0xff] (!%p2720_p13)  }
  0xe4   : > { %1077 = vmatpush1.bf16.msra.mxu1 %v3143_v9  ;;  %1103 = vmatprep.subr.bf16.mxu0 %v3154_v12  ;;  %v3201_v9 = vld [vmem:[#allocation8 + $0x20] ss:$16 sps:$4 sm:$0xff] (!%p2720_p13)   ;;  %v3205_v12 = vld [vmem:[#allocation8 + $0x4c] ss:$16 sps:$4 sm:$0xff] (!%p2720_p13)  }
  0xe5   : > { %1078 = vmatprep.subr.bf16.mxu1 %v3151_v11  ;;  %v3203_v11 = vld [vmem:[#allocation8 + $0x44] ss:$16 sps:$4 sm:$0xff] (!%p2720_p13)  }
  0xe7   : > { %1104 = vmatpush1.bf16.msra.mxu0 %v3152_v14  ;;  %v3208_v14 = vld [vmem:[#allocation8 + $0x48] ss:$16 sps:$4 sm:$0xff] (!%p2720_p13)  }
  0xe8   : > { %1079 = vmatpush1.bf16.msra.mxu1 %v3149_v13  ;;  %1105 = vmatprep.subr.bf16.mxu0 %v3160_v16  ;;  %v3207_v13 = vld [vmem:[#allocation8 + $0x40] ss:$16 sps:$4 sm:$0xff] (!%p2720_p13)   ;;  %v3211_v16 = vld [vmem:[#allocation8 + $0x6c] ss:$16 sps:$4 sm:$0xff] (!%p2720_p13)  }
  0xe9   : > { %1080 = vmatprep.subr.bf16.mxu1 %v3157_v15  ;;  %v3209_v15 = vld [vmem:[#allocation8 + $0x64] ss:$16 sps:$4 sm:$0xff] (!%p2720_p13)  }
  0xeb   : > { %1106 = vmatpush1.bf16.msra.mxu0 %v3158_v18  ;;  %v3214_v18 = vld [vmem:[#allocation8 + $0x68] ss:$16 sps:$4 sm:$0xff] (!%p2720_p13)  }
  0xec   : > { %1081 = vmatpush1.bf16.msra.mxu1 %v3155_v17  ;;  %1107 = vmatprep.subr.bf16.mxu0 %v3166_v20  ;;  %v3213_v17 = vld [vmem:[#allocation8 + $0x60] ss:$16 sps:$4 sm:$0xff] (!%p2720_p13)   ;;  %v3217_v20 = vld [vmem:[#allocation8 + $0x8c] ss:$16 sps:$4 sm:$0xff] (!%p2720_p13)  }
  0xed   : > { %1082 = vmatprep.subr.bf16.mxu1 %v3163_v19  ;;  %v3215_v19 = vld [vmem:[#allocation8 + $0x84] ss:$16 sps:$4 sm:$0xff] (!%p2720_p13)  }
  0xef   : > { %1108 = vmatpush1.bf16.msra.mxu0 %v3164_v22  ;;  %v3220_v22 = vld [vmem:[#allocation8 + $0x88] ss:$16 sps:$4 sm:$0xff] (!%p2720_p13)  }
  0xf0   : > { %1083 = vmatpush1.bf16.msra.mxu1 %v3161_v21  ;;  %1109 = vmatprep.subr.bf16.mxu0 %v3172_v23  ;;  %v3219_v21 = vld [vmem:[#allocation8 + $0x80] ss:$16 sps:$4 sm:$0xff] (!%p2720_p13)   ;;  %v3223_v23 = vld [vmem:[#allocation8 + $0xac] ss:$16 sps:$4 sm:$0xff] (!%p2720_p13)  }
  0xf1   : > { %1084 = vmatprep.subr.bf16.mxu1 %v3169_v3  ;;  %v3221_v3 = vld [vmem:[#allocation8 + $0xa4] ss:$16 sps:$4 sm:$0xff] (!%p2720_p13)  }
  0xf3   : > { %1110 = vmatpush1.bf16.msra.mxu0 %v3170_v25  ;;  %v3226_v25 = vld [vmem:[#allocation8 + $0xa8] ss:$16 sps:$4 sm:$0xff] (!%p2720_p13)  }
  0xf4   : > { %1085 = vmatpush1.bf16.msra.mxu1 %v3167_v24  ;;  %1111 = vmatprep.subr.bf16.mxu0 %v3178_v27  ;;  %v3225_v24 = vld [vmem:[#allocation8 + $0xa0] ss:$16 sps:$4 sm:$0xff] (!%p2720_p13)   ;;  %v3229_v27 = vld [vmem:[#allocation8 + $0xcc] ss:$16 sps:$4 sm:$0xff] (!%p2720_p13)  }
  0xf5   : > { %1086 = vmatprep.subr.bf16.mxu1 %v3175_v26  ;;  %v3227_v26 = vld [vmem:[#allocation8 + $0xc4] ss:$16 sps:$4 sm:$0xff] (!%p2720_p13)  }
  0xf7   : > { %1112 = vmatpush1.bf16.msra.mxu0 %v3176_v29  ;;  %v3232_v29 = vld [vmem:[#allocation8 + $0xc8] ss:$16 sps:$4 sm:$0xff] (!%p2720_p13)  }
  0xf8   : > { %1087 = vmatpush1.bf16.msra.mxu1 %v3173_v28  ;;  %1113 = vmatprep.subr.bf16.mxu0 %v3184_v31  ;;  %v3231_v28 = vld [vmem:[#allocation8 + $0xc0] ss:$16 sps:$4 sm:$0xff] (!%p2720_p13)   ;;  %v3235_v31 = vld [vmem:[#allocation8 + $0xec] ss:$16 sps:$4 sm:$0xff] (!%p2720_p13)  }
  0xf9   : > { %1088 = vmatprep.subr.bf16.mxu1 %v3181_v30  ;;  %v3233_v30 = vld [vmem:[#allocation8 + $0xe4] ss:$16 sps:$4 sm:$0xff] (!%p2720_p13)  }
  0xfb   : > { %1114 = vmatpush1.bf16.msra.mxu0 %v3182_v33  ;;  %v3238_v33 = vld [vmem:[#allocation8 + $0xe8] ss:$16 sps:$4 sm:$0xff] (!%p2720_p13)  }
  0xfc   : > { %1089 = vmatpush1.bf16.msra.mxu1 %v3179_v32  ;;  %1115 = vmatprep.subr.bf16.mxu0 %v3190_v35  ;;  %v3237_v32 = vld [vmem:[#allocation8 + $0xe0] ss:$16 sps:$4 sm:$0xff] (!%p2720_p13)   ;;  %v3241_v35 = vld [vmem:[#allocation8 + $0x10c] ss:$16 sps:$4 sm:$0xff] (!%p2720_p13)  }
  0xfd   : > { %1090 = vmatprep.subr.bf16.mxu1 %v3187_v34  ;;  %v3239_v34 = vld [vmem:[#allocation8 + $0x104] ss:$16 sps:$4 sm:$0xff] (!%p2720_p13)  }
  0xff   : > { %1116 = vmatpush1.bf16.msra.mxu0 %v3188_v38  ;;  %v3244_v38 = vld [vmem:[#allocation8 + $0x108] ss:$16 sps:$4 sm:$0xff] (!%p2720_p13)  }
 0x100   : > { %1091 = vmatpush1.bf16.msra.mxu1 %v3185_v37  ;;  %1978 = vmatprep.subr.bf16.mxu0 (!%p2720_p13), %v3191_v2  ;;  %v3243_v37 = vld [vmem:[#allocation8 + $0x100] ss:$16 sps:$4 sm:$0xff] (!%p2720_p13)   ;;  %v3274_v2 = vld [vmem:[#allocation8 + $0x1a8] ss:$16 sps:$4 sm:$0xff] (!%p2720_p13)  }
 0x101   : > { %2060 = vmatprep.subr.bf16.mxu1 (!%p2720_p13), %v3193_v4  ;;  %v3275_v4 = vld [vmem:[#allocation8 + $0x1c4] ss:$16 sps:$4 sm:$0xff] (!%p2720_p13)  }
 0x102   : > { %1134 = vmatmul.mubr.bf16.vlgmr.msra.gmra.mrb[4].mxu0 %v3938_v36 }
 0x103   : > { %1093 = vmatmul.mubr.bf16.vlgmr.msra.gmra.mrb[4].mxu1 %v3974_v8  ;;  %1979 = vmatpush1.bf16.msra.mxu0 (!%p2720_p13), %v3195_v5  ;;  %v3199_v8 = vld [vmem:[#allocation8 + $0x2c] ss:$16 sps:$4 sm:$0xff] (!%p2720_p13)  }
 0x104   : > { %2061 = vmatpush1.bf16.msra.mxu1 (!%p2720_p13), %v3196_v6  ;;  %1980 = vmatprep.subr.bf16.mxu0 (!%p2720_p13), %v3197_v7  ;;  %v3277_v5 = vld [vmem:[#allocation8 + $0x1cc] ss:$16 sps:$4 sm:$0xff] (!%p2720_p13)   ;;  %v3279_v6 = vld [vmem:[#allocation8 + $0x1c0] ss:$16 sps:$4 sm:$0xff] (!%p2720_p13)   ;;  %v3280_v7 = vld [vmem:[#allocation8 + $0x1c8] ss:$16 sps:$4 sm:$0xff] (!%p2720_p13)  }
 0x105   : > { %2062 = vmatprep.subr.bf16.mxu1 (!%p2720_p13), %v3199_v8 }
 0x107   : > { %1981 = vmatpush1.bf16.msra.mxu0 (!%p2720_p13), %v3201_v9  ;;  %v3281_v9 = vld [vmem:[#allocation8 + $0x1e4] ss:$16 sps:$4 sm:$0xff] (!%p2720_p13)  }
 0x108   : > { %2063 = vmatpush1.bf16.msra.mxu1 (!%p2720_p13), %v3202_v10  ;;  %1982 = vmatprep.subr.bf16.mxu0 (!%p2720_p13), %v3203_v11  ;;  %v3283_v11 = vld [vmem:[#allocation8 + $0x1ec] ss:$16 sps:$4 sm:$0xff] (!%p2720_p13)  }
 0x109   : > { %2064 = vmatprep.subr.bf16.mxu1 (!%p2720_p13), %v3205_v12  ;;  %v3285_v12 = vld [vmem:[#allocation8 + $0x1e0] ss:$16 sps:$4 sm:$0xff] (!%p2720_p13)  }
 0x10b   : > { %1983 = vmatpush1.bf16.msra.mxu0 (!%p2720_p13), %v3207_v13 }
 0x10c   : > { %2065 = vmatpush1.bf16.msra.mxu1 (!%p2720_p13), %v3208_v14  ;;  %1984 = vmatprep.subr.bf16.mxu0 (!%p2720_p13), %v3209_v15  ;;  %v3286_v14 = vld [vmem:[#allocation8 + $0x1e8] ss:$16 sps:$4 sm:$0xff] (!%p2720_p13)   ;;  %v3289_v15 = vld [vmem:[#allocation8 + $0x204] ss:$16 sps:$4 sm:$0xff] (!%p2720_p13)  }
 0x10d   : > { %2066 = vmatprep.subr.bf16.mxu1 (!%p2720_p13), %v3211_v16  ;;  %v3292_v16 = vld [vmem:[#allocation8 + $0x20c] ss:$16 sps:$4 sm:$0xff] (!%p2720_p13)  }
 0x10f   : > { %1985 = vmatpush1.bf16.msra.mxu0 (!%p2720_p13), %v3213_v17  ;;  %v3287_v17 = vld [vmem:[#allocation8 + $0x200] ss:$16 sps:$4 sm:$0xff] (!%p2720_p13)  }
 0x110   : > { %2067 = vmatpush1.bf16.msra.mxu1 (!%p2720_p13), %v3214_v18  ;;  %1986 = vmatprep.subr.bf16.mxu0 (!%p2720_p13), %v3215_v19  ;;  %v3290_v19 = vld [vmem:[#allocation8 + $0x208] ss:$16 sps:$4 sm:$0xff] (!%p2720_p13)  }
 0x111   : > { %2068 = vmatprep.subr.bf16.mxu1 (!%p2720_p13), %v3217_v20  ;;  %v3295_v20 = vld [vmem:[#allocation8 + $0x224] ss:$16 sps:$4 sm:$0xff] (!%p2720_p13)  }
 0x113   : > { %1987 = vmatpush1.bf16.msra.mxu0 (!%p2720_p13), %v3219_v21  ;;  %v3298_v21 = vld [vmem:[#allocation8 + $0x22c] ss:$16 sps:$4 sm:$0xff] (!%p2720_p13)  }
 0x114   : > { %2069 = vmatpush1.bf16.msra.mxu1 (!%p2720_p13), %v3220_v22  ;;  %1988 = vmatprep.subr.bf16.mxu0 (!%p2720_p13), %v3221_v3  ;;  %v3293_v22 = vld [vmem:[#allocation8 + $0x220] ss:$16 sps:$4 sm:$0xff] (!%p2720_p13)   ;;  %v3296_v3 = vld [vmem:[#allocation8 + $0x228] ss:$16 sps:$4 sm:$0xff] (!%p2720_p13)  }
 0x115   : > { %2070 = vmatprep.subr.bf16.mxu1 (!%p2720_p13), %v3223_v23  ;;  %v3301_v23 = vld [vmem:[#allocation8 + $0x244] ss:$16 sps:$4 sm:$0xff] (!%p2720_p13)  }
 0x117   : > { %1989 = vmatpush1.bf16.msra.mxu0 (!%p2720_p13), %v3225_v24  ;;  %v3304_v24 = vld [vmem:[#allocation8 + $0x24c] ss:$16 sps:$4 sm:$0xff] (!%p2720_p13)  }
 0x118   : > { %2071 = vmatpush1.bf16.msra.mxu1 (!%p2720_p13), %v3226_v25  ;;  %1990 = vmatprep.subr.bf16.mxu0 (!%p2720_p13), %v3227_v26  ;;  %v3299_v25 = vld [vmem:[#allocation8 + $0x240] ss:$16 sps:$4 sm:$0xff] (!%p2720_p13)   ;;  %v3302_v26 = vld [vmem:[#allocation8 + $0x248] ss:$16 sps:$4 sm:$0xff] (!%p2720_p13)  }
 0x119   : > { %2072 = vmatprep.subr.bf16.mxu1 (!%p2720_p13), %v3229_v27  ;;  %v3307_v27 = vld [vmem:[#allocation8 + $0x264] ss:$16 sps:$4 sm:$0xff] (!%p2720_p13)  }
 0x11b   : > { %1991 = vmatpush1.bf16.msra.mxu0 (!%p2720_p13), %v3231_v28  ;;  %v3310_v28 = vld [vmem:[#allocation8 + $0x26c] ss:$16 sps:$4 sm:$0xff] (!%p2720_p13)  }
 0x11c   : > { %2073 = vmatpush1.bf16.msra.mxu1 (!%p2720_p13), %v3232_v29  ;;  %1992 = vmatprep.subr.bf16.mxu0 (!%p2720_p13), %v3233_v30  ;;  %v3305_v29 = vld [vmem:[#allocation8 + $0x260] ss:$16 sps:$4 sm:$0xff] (!%p2720_p13)   ;;  %v3308_v30 = vld [vmem:[#allocation8 + $0x268] ss:$16 sps:$4 sm:$0xff] (!%p2720_p13)  }
 0x11d   : > { %2074 = vmatprep.subr.bf16.mxu1 (!%p2720_p13), %v3235_v31  ;;  %v3313_v31 = vld [vmem:[#allocation8 + $0x284] ss:$16 sps:$4 sm:$0xff] (!%p2720_p13)  }
 0x11f   : > { %1993 = vmatpush1.bf16.msra.mxu0 (!%p2720_p13), %v3237_v32  ;;  %v3316_v32 = vld [vmem:[#allocation8 + $0x28c] ss:$16 sps:$4 sm:$0xff] (!%p2720_p13)  }
 0x120   : > { %2075 = vmatpush1.bf16.msra.mxu1 (!%p2720_p13), %v3238_v33  ;;  %1994 = vmatprep.subr.bf16.mxu0 (!%p2720_p13), %v3239_v34  ;;  %v3311_v33 = vld [vmem:[#allocation8 + $0x280] ss:$16 sps:$4 sm:$0xff] (!%p2720_p13)  }
 0x121   : > { %2076 = vmatprep.subr.bf16.mxu1 (!%p2720_p13), %v3241_v35  ;;  %v3314_v35 = vld [vmem:[#allocation8 + $0x288] ss:$16 sps:$4 sm:$0xff] (!%p2720_p13)  }
 0x123   : > { %1995 = vmatpush1.bf16.msra.mxu0 (!%p2720_p13), %v3243_v37  ;;  %v3319_v37 = vld [vmem:[#allocation8 + $0x2a4] ss:$16 sps:$4 sm:$0xff] (!%p2720_p13)  }
 0x124   : > { %2077 = vmatpush1.bf16.msra.mxu1 (!%p2720_p13), %v3244_v38  ;;  %v3322_v38 = vld [vmem:[#allocation8 + $0x2ac] ss:$16 sps:$4 sm:$0xff] (!%p2720_p13)  }
 0x196   : > { %v1053_v39 = vpop.f32.mrb[0].mxu1 }
 0x197   : > { %v1055_v40 = vpop.f32.mrb[1].mxu1 }
 0x198   : > { %v1057_v41 = vpop.f32.mrb[2].mxu1 }
 0x199   : > { %v1058_v42 = vpop.f32.mrb[3].mxu1  ;;  %v3247_v41 = vld [vmem:[#allocation8 + $0x12c] ss:$16 sps:$4 sm:$0xff] (!%p2720_p13)  }
 0x19a   : > { %v3249_v42 = vld [vmem:[#allocation8 + $0x120] ss:$16 sps:$4 sm:$0xff] (!%p2720_p13)   ;;  %2078 = vmatprep.subr.bf16.mxu1 (!%p2720_p13), %v3247_v41  ;;  %v3320_v41 = vld [vmem:[#allocation8 + $0x2a8] ss:$16 sps:$4 sm:$0xff] (!%p2720_p13)  }
 0x1b5   : > { %v1012_v44 = vpop.f32.mrb[0].mxu0 }
 0x1b6   : > { %v1054_v45 = vadd.f32 %v1053_v39, %v1012_v44  ;;  %v1014_v47 = vpop.f32.mrb[1].mxu0  ;;  %v3245_v39 = vld [vmem:[#allocation8 + $0x124] ss:$16 sps:$4 sm:$0xff] (!%p2720_p13)  }
 0x1b7   : > { %v1056_v48 = vadd.f32 %v1055_v40, %v1014_v47  ;;  %v1016_v49 = vpop.f32.mrb[2].mxu0  ;;  %v1160_v40 = vlaneseq (!%p2720_p13)  ;;  %v3251_v44 = vld [vmem:[#allocation8 + $0x144] ss:$16 sps:$4 sm:$0xff] (!%p2720_p13)   ;;  %1996 = vmatprep.subr.bf16.mxu0 (!%p2720_p13), %v3245_v39  ;;  %v3255_v47 = vld [vmem:[#allocation8 + $0x140] ss:$16 sps:$4 sm:$0xff] (!%p2720_p13)  }
 0x1b8   : > { %v1142_v50 = vadd.f32 %v1054_v45, %v385_v43  ;;  %v1017_v51 = vpop.f32.mrb[3].mxu0  ;;  %v3250_v43 = vld [vmem:[#allocation8 + $0x128] ss:$16 sps:$4 sm:$0xff] (!%p2720_p13)   ;;  %1997 = vmatpush1.bf16.msra.mxu0 (!%p2720_p13), %v3249_v42  ;;  %v3257_v49 = vld [vmem:[#allocation8 + $0x164] ss:$16 sps:$4 sm:$0xff] (!%p2720_p13)  }
 0x1b9   : > { %v1143_v52 = vadd.f32 %v1056_v48, %v386_v46  ;;  %v4011_v45 = vshrl.u32 (!%p2720_p13), %v1160_v40, 7  ;;  %v3253_v46 = vld [vmem:[#allocation8 + $0x14c] ss:$16 sps:$4 sm:$0xff] (!%p2720_p13)   ;;  %v3256_v48 = vld [vmem:[#allocation8 + $0x148] ss:$16 sps:$4 sm:$0xff] (!%p2720_p13)   ;;  %2079 = vmatpush1.bf16.msra.mxu1 (!%p2720_p13), %v3250_v43  ;;  %1998 = vmatprep.subr.bf16.mxu0 (!%p2720_p13), %v3251_v44 }
 0x1ba   : > { %1146 = vst [vmem:[#allocation2] sm:$0xff] %v1142_v50  ;;  %2080 = vmatprep.subr.bf16.mxu1 (!%p2720_p13), %v3253_v46  ;;  %v3259_v51 = vld [vmem:[#allocation8 + $0x16c] ss:$16 sps:$4 sm:$0xff] (!%p2720_p13)   ;;  %v3317_v39 = vld [vmem:[#allocation8 + $0x2a0] ss:$16 sps:$4 sm:$0xff] (!%p2720_p13)  }
 0x1bb   : > { %1147 = vst [vmem:[#allocation2 + $0x8] sm:$0xff] %v1143_v52  ;;  %v1166_v50 = vsub.s32 (!%p2720_p13), 1, %v4011_v45  ;;  %v1174_v34 = vsub.s32 (!%p2720_p13), 3, %v4011_v45  ;;  %v3325_v42 = vld [vmem:[#allocation8 + $0x2c4] ss:$16 sps:$4 sm:$0xff] (!%p2720_p13)  }
 0x1bc   : > { %1999 = vmatpush1.bf16.msra.mxu0 (!%p2720_p13), %v3255_v47  ;;  %v3328_v43 = vld [vmem:[#allocation8 + $0x2cc] ss:$16 sps:$4 sm:$0xff] (!%p2720_p13)   ;;  %v3323_v44 = vld [vmem:[#allocation8 + $0x2c0] ss:$16 sps:$4 sm:$0xff] (!%p2720_p13)   ;;  %v1170_v47 = vsub.s32 (!%p2720_p13), 2, %v4011_v45 }
 0x1bd   : > { %2081 = vmatpush1.bf16.msra.mxu1 (!%p2720_p13), %v3256_v48  ;;  %2000 = vmatprep.subr.bf16.mxu0 (!%p2720_p13), %v3257_v49  ;;  %v3326_v48 = vld [vmem:[#allocation8 + $0x2c8] ss:$16 sps:$4 sm:$0xff] (!%p2720_p13)  }
 0x1be   : > { %2082 = vmatprep.subr.bf16.mxu1 (!%p2720_p13), %v3259_v51  ;;  %v3331_v51 = vld [vmem:[#allocation8 + $0x2e4] ss:$16 sps:$4 sm:$0xff] (!%p2720_p13)  }
 0x1c1   : > { %v1154_v10 = vld [vmem:[#allocation2] sm:$0xff] (!%p2720_p13) }
 0x1c2   : > { %v1155_v52 = vld [vmem:[#allocation2 + $0x8] sm:$0xff] (!%p2720_p13) }
 0x1d5   : > { %v1135_v55 = vpop.f32.mrb[4].mxu0 }
 0x1d6   : > { %v1094_v53 = vpop.f32.mrb[4].mxu1  ;;  %v1137_v58 = vpop.f32.mrb[5].mxu0  ;;  %1153 = sbr.rel (%p2720_p13) target bundleno = 997 (0x3e5), region = 72 }
 0x1d7   : > { %v1136_v36 = vadd.f32 %v1135_v55, %v1094_v53  ;;  %v1096_v56 = vpop.f32.mrb[5].mxu1  ;;  %v1139_v61 = vpop.f32.mrb[6].mxu0  ;;  %v4017_v53 = vld [vmem:[%s4091_s2] sm:$0xf] (!%p2720_p13) }
 0x1d8   : > { %v1138_v59 = vadd.f32 %v1137_v58, %v1096_v56  ;;  %v1098_v60 = vpop.f32.mrb[6].mxu1  ;;  %v1140_v0 = vpop.f32.mrb[7].mxu0  ;;  %v3262_v55 = vld [vmem:[#allocation8 + $0x168] ss:$16 sps:$4 sm:$0xff] (!%p2720_p13)   ;;  %v3263_v56 = vld [vmem:[#allocation8 + $0x184] ss:$16 sps:$4 sm:$0xff] (!%p2720_p13)   ;;  %v1175_v40 = vrot.slane (!%p2720_p13), %v4017_v53, %v1174_v34 }
 0x1d9   : > { %v1144_v62 = vadd.f32 %v1136_v36, %v387_v54  ;;  %v1099_v63 = vpop.f32.mrb[7].mxu1  ;;  %v3261_v54 = vld [vmem:[#allocation8 + $0x160] ss:$16 sps:$4 sm:$0xff] (!%p2720_p13)   ;;  %v1167_v36 = vrot.slane (!%p2720_p13), %v4017_v53, %v1166_v50  ;;  %2083 = vmatpush1.bf16.msra.mxu1 (!%p2720_p13), %v3262_v55  ;;  %v3268_v60 = vld [vmem:[#allocation8 + $0x188] ss:$16 sps:$4 sm:$0xff] (!%p2720_p13)  }
 0x1da   : > { %v1145_v1 = vadd.f32 %v1138_v59, %v388_v57  ;;  %v3265_v57 = vld [vmem:[#allocation8 + $0x18c] ss:$16 sps:$4 sm:$0xff] (!%p2720_p13)   ;;  %v3267_v59 = vld [vmem:[#allocation8 + $0x180] ss:$16 sps:$4 sm:$0xff] (!%p2720_p13)   ;;  %2001 = vmatpush1.bf16.msra.mxu0 (!%p2720_p13), %v3261_v54  ;;  %v3269_v61 = vld [vmem:[#allocation8 + $0x1a4] ss:$16 sps:$4 sm:$0xff] (!%p2720_p13)  }
 0x1db   : > { %1148 = vst [vmem:[#allocation2 + $0x10] sm:$0xff] %v1144_v62  ;;  %v1181_v58 = vadd.f32 (!%p2720_p13), %v1167_v36, %v1155_v52  ;;  %2002 = vmatprep.subr.bf16.mxu0 (!%p2720_p13), %v3263_v56  ;;  %2084 = vmatprep.subr.bf16.mxu1 (!%p2720_p13), %v3265_v57  ;;  %v3271_v63 = vld [vmem:[#allocation8 + $0x1ac] ss:$16 sps:$4 sm:$0xff] (!%p2720_p13)   ;;  %v3273_v0 = vld [vmem:[#allocation8 + $0x1a0] ss:$16 sps:$4 sm:$0xff] (!%p2720_p13)  }
 0x1dc   : > { %1149 = vst [vmem:[#allocation2 + $0x18] sm:$0xff] %v1145_v1  ;;  %v1162_v1 = vsub.s32 (!%p2720_p13), 0, %v4011_v45  ;;  %v3334_v52 = vld [vmem:[#allocation8 + $0x2ec] ss:$16 sps:$4 sm:$0xff] (!%p2720_p13)   ;;  %v3329_v55 = vld [vmem:[#allocation8 + $0x2e0] ss:$16 sps:$4 sm:$0xff] (!%p2720_p13)  }
 0x1dd   : > { %v1185_v62 = vpack.c.bf16 %v1181_v58, %v1181_v58  ;;  %2085 = vmatpush1.bf16.msra.mxu1 %v3268_v60  ;;  %v3332_v36 = vld [vmem:[#allocation8 + $0x2e8] ss:$16 sps:$4 sm:$0xff]   ;;  %v3337_v56 = vld [vmem:[#allocation8 + $0x304] ss:$16 sps:$4 sm:$0xff]   ;;  %v3340_v57 = vld [vmem:[#allocation8 + $0x30c] ss:$16 sps:$4 sm:$0xff]  }
 0x1de   : > { %2003 = vmatpush1.bf16.msra.mxu0 %v3267_v59  ;;  %2086 = vmatprep.subr.bf16.mxu1 %v3271_v63  ;;  %v1163_v8 = vrot.slane %v4017_v53, %v1162_v1  ;;  %v3335_v58 = vld [vmem:[#allocation8 + $0x300] ss:$16 sps:$4 sm:$0xff]   ;;  %v3338_v59 = vld [vmem:[#allocation8 + $0x308] ss:$16 sps:$4 sm:$0xff]   ;;  %v3343_v60 = vld [vmem:[#allocation8 + $0x324] ss:$16 sps:$4 sm:$0xff]  }
 0x1df   : > { %2010 = vmatprep.mubr.bf16.mxu0 %v1185_v62  ;;  %2092 = vmatprep.mubr.bf16.mxu1 %v1185_v62  ;;  %v3341_v62 = vld [vmem:[#allocation8 + $0x320] ss:$16 sps:$4 sm:$0xff]   ;;  %v3344_v63 = vld [vmem:[#allocation8 + $0x328] ss:$16 sps:$4 sm:$0xff]  }
 0x1e0   : > { %2004 = vmatprep.subr.bf16.mxu0 %v3269_v61  ;;  %v1180_v13 = vadd.f32 %v1163_v8, %v1154_v10  ;;  %v3346_v61 = vld [vmem:[#allocation8 + $0x32c] ss:$16 sps:$4 sm:$0xff]   ;;  %v3353_v8 = vld [vmem:[#allocation8 + $0x360] ss:$16 sps:$4 sm:$0xff]   ;;  %v3361_v10 = vld [vmem:[#allocation8 + $0x384] ss:$16 sps:$4 sm:$0xff]  }
 0x1e1   : > { %2087 = vmatpush1.bf16.msra.mxu1 %v3274_v2  ;;  %v3352_v2 = vld [vmem:[#allocation8 + $0x34c] ss:$16 sps:$4 sm:$0xff]  }
 0x1e2   : > { %2005 = vmatpush1.bf16.msra.mxu0 %v3273_v0  ;;  %2088 = vmatprep.subr.bf16.mxu1 %v3277_v5  ;;  %v1184_v18 = vpack.c.bf16 %v1180_v13, %v1180_v13  ;;  %v3349_v0 = vld [vmem:[#allocation8 + $0x344] ss:$16 sps:$4 sm:$0xff]   ;;  %v3350_v5 = vld [vmem:[#allocation8 + $0x348] ss:$16 sps:$4 sm:$0xff]  }
 0x1e3   : > { %2006 = vmatprep.subr.bf16.mxu0 %v3275_v4  ;;  %v1157_v46 = vld [vmem:[#allocation2 + $0x18] sm:$0xff]  ;;  %v3362_v13 = vld [vmem:[#allocation8 + $0x388] ss:$16 sps:$4 sm:$0xff]  }
 0x1e4   : > { %v1183_v49 = vadd.f32 %v1175_v40, %v1157_v46  ;;  %v3347_v4 = vld [vmem:[#allocation8 + $0x340] ss:$16 sps:$4 sm:$0xff]   ;;  %v3398_v46 = vld [vmem:[#allocation9 + $0x98] sm:$0xff]  }
 0x1e5   : > { %2089 = vmatpush1.bf16.msra.mxu1 %v3280_v7  ;;  %v3358_v7 = vld [vmem:[#allocation8 + $0x36c] ss:$16 sps:$4 sm:$0xff]   ;;  %v3393_v40 = vld [vmem:[#allocation9 + $0x10] sm:$0xff]  }
 0x1e6   : > { %2007 = vmatpush1.bf16.msra.mxu0 %v3279_v6  ;;  %2090 = vmatprep.subr.bf16.mxu1 %v3283_v11  ;;  %v1187_v54 = vpack.c.bf16 %v1183_v49, %v1183_v49  ;;  %v3355_v6 = vld [vmem:[#allocation8 + $0x364] ss:$16 sps:$4 sm:$0xff]   ;;  %v3364_v11 = vld [vmem:[#allocation8 + $0x38c] ss:$16 sps:$4 sm:$0xff]  }
 0x1e7   : > { %2008 = vmatprep.subr.bf16.mxu0 %v3281_v9  ;;  %v3356_v9 = vld [vmem:[#allocation8 + $0x368] ss:$16 sps:$4 sm:$0xff]   ;;  %v3400_v49 = vld [vmem:[#allocation9 + $0xe0] sm:$0xff]  }
 0x1e9   : > { %2091 = vmatpush1.bf16.msra.mxu1 %v3286_v14  ;;  %v3367_v14 = vld [vmem:[#allocation8 + $0x3a4] ss:$16 sps:$4 sm:$0xff]  }
 0x1ea   : > { %2009 = vmatpush1.bf16.msra.mxu0 %v3285_v12  ;;  %2101 = vmatprep.subr.bf16.mxu1 %v3292_v16  ;;  %v3359_v12 = vld [vmem:[#allocation8 + $0x380] ss:$16 sps:$4 sm:$0xff]  }
 0x1eb   : > { %2019 = vmatprep.subr.bf16.mxu0 %v3289_v15  ;;  %v3370_v15 = vld [vmem:[#allocation8 + $0x3ac] ss:$16 sps:$4 sm:$0xff]   ;;  %v3365_v16 = vld [vmem:[#allocation8 + $0x3a0] ss:$16 sps:$4 sm:$0xff]  }
 0x1ec   : > { %2093 = vmatmul.mubr.bf16.vlgmr.msra.gmra.mrb[0].mxu1 %v1184_v18 }
 0x1ed   : > { %2011 = vmatmul.mubr.bf16.vlgmr.msra.gmra.mrb[0].mxu0 %v1184_v18  ;;  %2102 = vmatpush1.bf16.msra.mxu1 %v3290_v19  ;;  %v3373_v18 = vld [vmem:[#allocation8 + $0x3c4] ss:$16 sps:$4 sm:$0xff]   ;;  %v3376_v19 = vld [vmem:[#allocation8 + $0x3cc] ss:$16 sps:$4 sm:$0xff]  }
 0x1ee   : > { %2020 = vmatpush1.bf16.msra.mxu0 %v3287_v17  ;;  %2103 = vmatprep.subr.bf16.mxu1 %v3298_v21  ;;  %v3368_v17 = vld [vmem:[#allocation8 + $0x3a8] ss:$16 sps:$4 sm:$0xff]   ;;  %v3371_v21 = vld [vmem:[#allocation8 + $0x3c0] ss:$16 sps:$4 sm:$0xff]  }
 0x1ef   : > { %2021 = vmatprep.subr.bf16.mxu0 %v3295_v20  ;;  %2051 = vmatprep.mubr.bf16.mxu0 %v1187_v54  ;;  %v1171_v20 = vrot.slane %v4017_v53, %v1170_v47  ;;  %v3385_v53 = vld [vmem:[#allocation9] sm:$0xff]  }
 0x1f0   : > { %2133 = vmatprep.mubr.bf16.mxu1 %v1187_v54  ;;  %v3403_v54 = vld [vmem:[#allocation9 + $0x68] sm:$0xff]  }
 0x1f1   : > { %2104 = vmatpush1.bf16.msra.mxu1 %v3296_v3  ;;  %v1156_v3 = vld [vmem:[#allocation2 + $0x10] sm:$0xff] }
 0x1f2   : > { %2022 = vmatpush1.bf16.msra.mxu0 %v3293_v22  ;;  %2105 = vmatprep.subr.bf16.mxu1 %v3304_v24  ;;  %v3374_v22 = vld [vmem:[#allocation8 + $0x3c8] ss:$16 sps:$4 sm:$0xff]   ;;  %v3382_v24 = vld [vmem:[#allocation8 + $0x3ec] ss:$16 sps:$4 sm:$0xff]  }
 0x1f3   : > { %2023 = vmatprep.subr.bf16.mxu0 %v3301_v23  ;;  %v3379_v23 = vld [vmem:[#allocation8 + $0x3e4] ss:$16 sps:$4 sm:$0xff]  }
 0x1f5   : > { %2106 = vmatpush1.bf16.msra.mxu1 %v3302_v26  ;;  %v3377_v26 = vld [vmem:[#allocation8 + $0x3e0] ss:$16 sps:$4 sm:$0xff]  }
 0x1f6   : > { %2024 = vmatpush1.bf16.msra.mxu0 %v3299_v25  ;;  %2107 = vmatprep.subr.bf16.mxu1 %v3310_v28  ;;  %v1182_v25 = vadd.f32 %v1171_v20, %v1156_v3  ;;  %v3383_v28 = vld [vmem:[#allocation9 + $0x40] sm:$0xff]  }
 0x1f7   : > { %2025 = vmatprep.subr.bf16.mxu0 %v3307_v27  ;;  %v3380_v27 = vld [vmem:[#allocation8 + $0x3e8] ss:$16 sps:$4 sm:$0xff]  }
 0x1f9   : > { %2108 = vmatpush1.bf16.msra.mxu1 %v3308_v30  ;;  %v1186_v30 = vpack.c.bf16 %v1182_v25, %v1182_v25 }
 0x1fa   : > { %2026 = vmatpush1.bf16.msra.mxu0 %v3305_v29  ;;  %2109 = vmatprep.subr.bf16.mxu1 %v3316_v32  ;;  %v3384_v29 = vld [vmem:[#allocation9 + $0xc0] sm:$0xff]   ;;  %v3387_v32 = vld [vmem:[#allocation9 + $0x48] sm:$0xff]  }
 0x1fb   : > { %2027 = vmatprep.subr.bf16.mxu0 %v3313_v31  ;;  %v3386_v31 = vld [vmem:[#allocation9 + $0x80] sm:$0xff]  }
 0x1fd   : > { %2110 = vmatpush1.bf16.msra.mxu1 %v3314_v35  ;;  %v3389_v35 = vld [vmem:[#allocation9 + $0x8] sm:$0xff]  }
 0x1fe   : > { %2028 = vmatpush1.bf16.msra.mxu0 %v3311_v33  ;;  %2111 = vmatprep.subr.bf16.mxu1 %v3322_v38  ;;  %v3388_v33 = vld [vmem:[#allocation9 + $0xc8] sm:$0xff]   ;;  %v3391_v38 = vld [vmem:[#allocation9 + $0x50] sm:$0xff]  }
 0x1ff   : > { %2029 = vmatprep.subr.bf16.mxu0 %v3319_v37  ;;  %v3390_v37 = vld [vmem:[#allocation9 + $0x88] sm:$0xff]  }
 0x201   : > { %2112 = vmatpush1.bf16.msra.mxu1 %v3320_v41  ;;  %v3394_v41 = vld [vmem:[#allocation9 + $0x90] sm:$0xff]  }
 0x202   : > { %2030 = vmatpush1.bf16.msra.mxu0 %v3317_v39  ;;  %2113 = vmatprep.subr.bf16.mxu1 %v3328_v43  ;;  %v3392_v39 = vld [vmem:[#allocation9 + $0xd0] sm:$0xff]   ;;  %v3396_v43 = vld [vmem:[#allocation9 + $0xd8] sm:$0xff]  }
 0x203   : > { %2031 = vmatprep.subr.bf16.mxu0 %v3325_v42  ;;  %v3395_v42 = vld [vmem:[#allocation9 + $0x58] sm:$0xff]  }
 0x205   : > { %2114 = vmatpush1.bf16.msra.mxu1 %v3326_v48  ;;  %v3399_v48 = vld [vmem:[#allocation9 + $0x60] sm:$0xff]  }
 0x206   : > { %2032 = vmatpush1.bf16.msra.mxu0 %v3323_v44  ;;  %2115 = vmatprep.subr.bf16.mxu1 %v3334_v52  ;;  %v3397_v44 = vld [vmem:[#allocation9 + $0x18] sm:$0xff]   ;;  %v3402_v52 = vld [vmem:[#allocation9 + $0xa0] sm:$0xff]  }
 0x207   : > { %2033 = vmatprep.subr.bf16.mxu0 %v3331_v51  ;;  %v3401_v51 = vld [vmem:[#allocation9 + $0x20] sm:$0xff]  }
 0x209   : > { %2116 = vmatpush1.bf16.msra.mxu1 %v3332_v36  ;;  %v3405_v36 = vld [vmem:[#allocation9 + $0x28] sm:$0xff]  }
 0x20a   : > { %2034 = vmatpush1.bf16.msra.mxu0 %v3329_v55  ;;  %2117 = vmatprep.subr.bf16.mxu1 %v3340_v57  ;;  %v3404_v55 = vld [vmem:[#allocation9 + $0xe8] sm:$0xff]   ;;  %v3407_v57 = vld [vmem:[#allocation9 + $0x70] sm:$0xff]  }
 0x20b   : > { %2035 = vmatprep.subr.bf16.mxu0 %v3337_v56  ;;  %v3406_v56 = vld [vmem:[#allocation9 + $0xa8] sm:$0xff]  }
 0x20d   : > { %2118 = vmatpush1.bf16.msra.mxu1 %v3338_v59  ;;  %v3409_v59 = vld [vmem:[#allocation9 + $0x30] sm:$0xff]  }
 0x20e   : > { %2036 = vmatpush1.bf16.msra.mxu0 %v3335_v58  ;;  %2119 = vmatprep.subr.bf16.mxu1 %v3346_v61  ;;  %v3408_v58 = vld [vmem:[#allocation9 + $0xf0] sm:$0xff]   ;;  %v3411_v61 = vld [vmem:[#allocation9 + $0x78] sm:$0xff]  }
 0x20f   : > { %2037 = vmatprep.subr.bf16.mxu0 %v3343_v60  ;;  %v3410_v60 = vld [vmem:[#allocation9 + $0xb0] sm:$0xff]  }
 0x211   : > { %2120 = vmatpush1.bf16.msra.mxu1 %v3344_v63  ;;  %v3413_v63 = vld [vmem:[#allocation9 + $0x38] sm:$0xff]  }
 0x212   : > { %2038 = vmatpush1.bf16.msra.mxu0 %v3341_v62  ;;  %2121 = vmatprep.subr.bf16.mxu1 %v3352_v2  ;;  %v3412_v62 = vld [vmem:[#allocation9 + $0xf8] sm:$0xff]   ;;  %v1316_v2 = vld [vmem:[%s4093_s4] sm:$0xf] }
 0x213   : > { %2039 = vmatprep.subr.bf16.mxu0 %v3349_v0  ;;  %v3414_v0 = vld [vmem:[#allocation9 + $0xb8] sm:$0xff]  }
 0x215   : > { %2122 = vmatpush1.bf16.msra.mxu1 %v3350_v5  ;;  %v1329_v5 = vrot.slane %v1316_v2, %v1170_v47 }
 0x216   : > { %2040 = vmatpush1.bf16.msra.mxu0 %v3347_v4  ;;  %2123 = vmatprep.subr.bf16.mxu1 %v3358_v7  ;;  %v1321_v4 = vrot.slane %v1316_v2, %v1162_v1  ;;  %v1333_v7 = vrot.slane %v1316_v2, %v1174_v34 }
 0x217   : > { %2041 = vmatprep.subr.bf16.mxu0 %v3355_v6  ;;  %v1325_v6 = vrot.slane %v1316_v2, %v1166_v50 }
 0x219   : > { %2124 = vmatpush1.bf16.msra.mxu1 %v3356_v9 }
 0x21a   : > { %2042 = vmatpush1.bf16.msra.mxu0 %v3353_v8  ;;  %2125 = vmatprep.subr.bf16.mxu1 %v3364_v11 }
 0x21b   : > { %2043 = vmatprep.subr.bf16.mxu0 %v3361_v10 }
 0x21d   : > { %2126 = vmatpush1.bf16.msra.mxu1 %v3362_v13 }
 0x21e   : > { %2044 = vmatpush1.bf16.msra.mxu0 %v3359_v12  ;;  %2127 = vmatprep.subr.bf16.mxu1 %v3370_v15 }
 0x21f   : > { %2045 = vmatprep.subr.bf16.mxu0 %v3367_v14 }
 0x221   : > { %2128 = vmatpush1.bf16.msra.mxu1 %v3368_v17 }
 0x222   : > { %2046 = vmatpush1.bf16.msra.mxu0 %v3365_v16  ;;  %2129 = vmatprep.subr.bf16.mxu1 %v3376_v19 }
 0x223   : > { %2047 = vmatprep.subr.bf16.mxu0 %v3373_v18 }
 0x225   : > { %2130 = vmatpush1.bf16.msra.mxu1 %v3374_v22 }
 0x226   : > { %2048 = vmatpush1.bf16.msra.mxu0 %v3371_v21  ;;  %2131 = vmatprep.subr.bf16.mxu1 %v3382_v24  ;;  %v2849_v24 = vld [vmem:[%s4095_s6] ss:$0 sm:$0xff] }
 0x227   : > { %2049 = vmatprep.subr.bf16.mxu0 %v3379_v23 }
 0x229   : > { %2132 = vmatpush1.bf16.msra.mxu1 %v3380_v27 }
 0x22a   : > { %2050 = vmatpush1.bf16.msra.mxu0 %v3377_v26  ;;  %2912 = vmatprep.subr.bf16.mxu1 %v3384_v29 }
 0x22b   : > { %2890 = vmatprep.subr.bf16.mxu0 %v3383_v28 }
 0x22c   : > { %2134 = vmatmul.mubr.bf16.vlgmr.msra.gmra.mrb[0].mxu1 %v1186_v30 }
 0x22d   : > { %2052 = vmatmul.mubr.bf16.vlgmr.msra.gmra.mrb[0].mxu0 %v1186_v30  ;;  %2913 = vmatpush3.bf16.msra.mxu1 %v3386_v31 }
 0x22e   : > { %2891 = vmatpush3.bf16.msra.mxu0 %v3385_v53  ;;  %2914 = vmatprep.subr.bf16.mxu1 %v3388_v33 }
 0x22f   : > { %2892 = vmatprep.subr.bf16.mxu0 %v3387_v32 }
 0x231   : > { %2915 = vmatpush3.bf16.msra.mxu1 %v3390_v37 }
 0x232   : > { %2893 = vmatpush3.bf16.msra.mxu0 %v3389_v35  ;;  %2916 = vmatprep.subr.bf16.mxu1 %v3392_v39 }
 0x233   : > { %2894 = vmatprep.subr.bf16.mxu0 %v3391_v38 }
 0x235   : > { %2917 = vmatpush3.bf16.msra.mxu1 %v3394_v41 }
 0x236   : > { %2895 = vmatpush3.bf16.msra.mxu0 %v3393_v40  ;;  %2918 = vmatprep.subr.bf16.mxu1 %v3396_v43 }
 0x237   : > { %2896 = vmatprep.subr.bf16.mxu0 %v3395_v42 }
 0x239   : > { %2919 = vmatpush3.bf16.msra.mxu1 %v3398_v46 }
 0x23a   : > { %2897 = vmatpush3.bf16.msra.mxu0 %v3397_v44  ;;  %2920 = vmatprep.subr.bf16.mxu1 %v3400_v49 }
 0x23b   : > { %2898 = vmatprep.subr.bf16.mxu0 %v3399_v48 }
 0x23d   : > { %2921 = vmatpush3.bf16.msra.mxu1 %v3402_v52 }
 0x23e   : > { %2899 = vmatpush3.bf16.msra.mxu0 %v3401_v51  ;;  %2922 = vmatprep.subr.bf16.mxu1 %v3404_v55 }
 0x23f   : > { %2900 = vmatprep.subr.bf16.mxu0 %v3403_v54 }
 0x241   : > { %2923 = vmatpush3.bf16.msra.mxu1 %v3406_v56 }
 0x242   : > { %2901 = vmatpush3.bf16.msra.mxu0 %v3405_v36  ;;  %2924 = vmatprep.subr.bf16.mxu1 %v3408_v58 }
 0x243   : > { %2902 = vmatprep.subr.bf16.mxu0 %v3407_v57 }
 0x245   : > { %2925 = vmatpush3.bf16.msra.mxu1 %v3410_v60 }
 0x246   : > { %2903 = vmatpush3.bf16.msra.mxu0 %v3409_v59  ;;  %2926 = vmatprep.subr.bf16.mxu1 %v3412_v62 }
 0x247   : > { %2904 = vmatprep.subr.bf16.mxu0 %v3411_v61 }
 0x249   : > { %2927 = vmatpush3.bf16.msra.mxu1 %v3414_v0 }
 0x24a   : > { %2905 = vmatpush3.bf16.msra.mxu0 %v3413_v63 }
 0x2ff   : > { %v2135_v9 = vpop.f32.mrb[0].mxu1 }
 0x300   : > { %v2053_v8 = vpop.f32.mrb[0].mxu0  ;;  %v2936_v11 = vadd.f32 %v2135_v9, %v1329_v5  ;;  %v2137_v13 = vpop.f32.mrb[1].mxu1 }
 0x301   : > { %v2934_v10 = vadd.f32 %v2053_v8, %v1321_v4  ;;  %v2055_v12 = vpop.f32.mrb[1].mxu0  ;;  %v2937_v15 = vadd.f32 %v2137_v13, %v1333_v7  ;;  %v2139_v17 = vpop.f32.mrb[2].mxu1 }
 0x302   : > { %v2935_v14 = vadd.f32 %v2055_v12, %v1325_v6  ;;  %v2057_v16 = vpop.f32.mrb[2].mxu0  ;;  %v2144_v18 = vmax.f32 %v2936_v11, 0.0  ;;  %v2140_v47 = vpop.f32.mrb[3].mxu1 }
 0x303   : > { %v2142_v1 = vmax.f32 %v2934_v10, 0.0  ;;  %v2058_v19 = vpop.f32.mrb[3].mxu0  ;;  %v2145_v21 = vmax.f32 %v2937_v15, 0.0 }
 0x304   : > { %v2143_v20 = vmax.f32 %v2935_v14, 0.0  ;;  %v2148_v34 = vpack.c.bf16 %v2144_v18, %v2144_v18 }
 0x305   : > { %v2149_v22 = vpack.c.bf16 %v2145_v21, %v2145_v21  ;;  %v2146_v45 = vpack.c.bf16 %v2142_v1, %v2142_v1 }
 0x306   : > { %v2147_v50 = vpack.c.bf16 %v2143_v20, %v2143_v20 }
 0x307   : > { %2485 = vmatprep.mubr.bf16.mxu1 %v2149_v22 }
 0x308   : > { %2445 = vmatprep.mubr.bf16.mxu0 %v2147_v50  ;;  %2486 = vmatmul.mubr.bf16.vlgmr.msra.gmra.mrb[4].mxu1 %v2148_v34 }
 0x309   : > { %2446 = vmatmul.mubr.bf16.vlgmr.msra.gmra.mrb[4].mxu0 %v2146_v45 }
 0x3db   : > { %v2928_v23 = vpop.f32.mrb[4].mxu1 }
 0x3dc   : > { %v2906_v3 = vpop.f32.mrb[4].mxu0  ;;  %v2929_v26 = vpop.f32.mrb[5].mxu1 }
 0x3dd   : > { %v2907_v25 = vpop.f32.mrb[5].mxu0  ;;  %v2930_v28 = vadd.f32 %v2929_v26, %v2928_v23  ;;  %v2931_v30 = vpop.f32.mrb[6].mxu1 }
 0x3de   : > { %v2908_v27 = vadd.f32 %v2907_v25, %v2906_v3  ;;  %v2909_v29 = vpop.f32.mrb[6].mxu0  ;;  %v2932_v31 = vpop.f32.mrb[7].mxu1 }
 0x3df   : > { %v2910_v53 = vpop.f32.mrb[7].mxu0 }
 0x3e0   : > { %v2448_v32 = vadd.f32 %v2908_v27, %v2849_v24 }
 0x3e2   : > { %v2488_v33 = vadd.f32 %v2930_v28, %v2448_v32 }
 0x3e4   : > { %2493 = vst [vmem:[#allocation11] sm:$0xff] %v2488_v33 }
 0x3e5 PF: > { %p2985_p2 = scmp.eq.s32.totalorder %s3705_s30, 1  ;;  %s3635_s22 = smov [#allocation11]  }
 0x3e6   : > { %s2503_s19 = sshll.u32 %s3635_s22, 4  ;;  %s2504_s19 = int_to_ptr.vmem [resolvable:$true] %s2503_s19 }
 0x3e7   : > { %s3531_s0 = scalar_lea.vmem %s2504_s19, 128  ;;  %p3538_p1 = scmp.lt.s32.totalorder %s2504_s19, %s2504_s19 }
 0x3e8   : > { %p3532_p3 = scmp.ne.s32.totalorder %s2504_s19, %s3531_s0  ;;  %p3539_p4 = scmp.lt.s32.totalorder %s3531_s0, %s3531_s0 }
 0x3ea   : > { %p3533_p0 = pnand %p3532_p3, %p2985_p2  ;;  %p3540_p12 = por %p3539_p4, %p3538_p1 }
 0x3ec   : > { %p3534_p6 = pneg %p3533_p0 }
 0x3ee   : > { %p3541_p9 = pnand %p3540_p12, %p3534_p6 }
 0x3f0   : > { %3544 = shalt.err (!%p3541_p9)
}
 0x3f1   : > { %s3545_s18 = scalar_lea.hbm %s4096_s7, 128 }
 0x3f2   : > { %p3546_p7 = scmp.ne.s32.totalorder %s4096_s7, %s3545_s18  ;;  %p3551_p10 = scmp.lt.u32.totalorder %s3545_s18, %s4096_s7 }
 0x3f4   : > { %p3547_p5 = pnand %p3546_p7, %p2985_p2 }
 0x3f6   : > { %p3548_p8 = pneg %p3547_p5 }
 0x3f8   : > { %p3553_p11 = pnand %p3551_p10, %p3548_p8 }
 0x3fa   : > { %3556 = shalt.err (!%p3553_p11)
}
 0x3fb   : > { %2963 = dma.vmem_to_hbm [thread:$0]  (%p2985_p2), %s2504_s19, 128, %s4096_s7, [#allocation5]  }
 0x3fc   : > { %3598 = dma.done.wait (%p2985_p2), [#allocation5], 128  }
 0x3fd   : > { %3600 = vsyncadd (%p2985_p2), [#allocation5], 4294967168 }
 0x3fe PF: > { %s25_s29 = sadd.s32 1, %s3623_s29   ;;  %s4118_s24 = smov %s3607_s25 }
 0x3ff   : > { %p22_p13 = scmp.ge.s32.totalorder %s25_s29, 4   ;;  %s4119_s25 = smov %s3611_s26 }
 0x400   : > { %s4120_s26 = smov %s3801_s21  ;;  %s4121_s27 = smov %s3619_s28 }
 0x401   : > { %s4122_s28 = smov %s4124_s16  ;;  %24 = sbr.rel (!%p22_p13) target bundleno = 11 (0xb), region = 115 }
 0x408   :  { %2516 = vsyncpa [#allocation4], 1 }
 0x409   :  { %2518 = vsyncpa [#allocation4 + $0x1], 1 }
 0x40a   :  { %2519 = vsyncpa [#allocation7], 1 }
 0x40b   :  { %2521 = vsyncpa [#allocation7 + $0x1], 1 }
 0x40c   :  { %2522 = vsyncpa [#allocation10], 1 }
 0x40d   :  { %2523 = vsyncpa [#allocation5], 1 }
 0x40e   :  { %2525 = vsyncpa [#allocation5 + $0x1], 1 }

</bundles_post_ra>
